<compile_context>
chip_gen: v7x
topology: tpu7x:2x2x1
jax: 0.10.0
libtpu: 0.0.40
codegen_flags: <defaults>
</compile_context>

<pallas_src>
import functools

import jax
import jax.numpy as jnp
import numpy as np
from jax.experimental import pallas as pl
from jax.experimental.pallas import tpu as pltpu


_SUB_B = 8  # batch sub-block = one f32 vreg worth of sublanes


def _round_up(n, m):
    return ((n + m - 1) // m) * m


def _kaf2d_kernel(xs_ref, x1_ref, x2_ref, alpha_ref, o_ref, *, gamma, D):
    """One (TB, TP) tile of the KAF2D forward pass.

    xs_ref:    (D,)       1-D dictionary grid, in SMEM (scalar reads)
    x1_ref:    (TB, TP)   first half of the activations (lane axis = P)
    x2_ref:    (TB, TP)   second half of the activations
    alpha_ref: (D*D, TP)  alpha[p, i*D+j] stored as [i*D+j, p] (lane axis = P)
    o_ref:     (TB, TP)
    """
    neg_gamma = jnp.float32(-gamma)
    tb, tp = o_ref.shape
    n_sub = tb // _SUB_B

    @pl.loop(0, n_sub)
    def _(sb):
        off = pl.multiple_of(sb * _SUB_B, _SUB_B)
        x1 = x1_ref[pl.ds(off, _SUB_B), :]            # (SB, TP)
        x2 = x2_ref[pl.ds(off, _SUB_B), :]            # (SB, TP)

        # Separable 1-D Gaussian slabs along the dictionary's x axis.  All D
        # (SB, TP) slabs stay live in registers across the i-loop below:
        # 2*D exps per element instead of D^2, no (TB, D, TP) intermediate,
        # no sublane padding, no XLU reductions, no VMEM spills.
        kx = []
        for j in range(D):
            d = x1 - xs_ref[j]
            kx.append(jnp.exp(neg_gamma * (d * d)))

        acc = jnp.zeros((_SUB_B, tp), jnp.float32)
        for i in range(D):
            d = x2 - xs_ref[i]
            ky_i = jnp.exp(neg_gamma * (d * d))       # gaussian vs Dy (row i)
            inner = jnp.zeros((_SUB_B, tp), jnp.float32)
            for j in range(D):
                # alpha row (TP,), broadcast over the SB sublanes; pure VALU.
                inner = inner + alpha_ref[i * D + j] * kx[j]
            acc = acc + ky_i * inner
        o_ref[pl.ds(off, _SUB_B), :] = acc.astype(o_ref.dtype)


def kaf2d_forward(x, xs, alpha, gamma, *, tile_b=None, tile_p=None):
    """KAF2D forward: x (B, 2P) -> y (B, P).

    xs:    (D,)      1-D dictionary grid (the meshgrid axis)
    alpha: (P, D*D)  mixing coefficients, row-major over the (Dy, Dx) meshgrid
    """
    B, two_p = x.shape
    assert two_p % 2 == 0, "KAF2D input feature dim must be even"
    P = two_p // 2
    D = int(xs.shape[-1])
    assert alpha.shape == (P, D * D)

    TP = _round_up(int(tile_p) if tile_p is not None
                   else min(256, _round_up(P, 128)), 128)
    TB = _round_up(int(tile_b) if tile_b is not None
                   else min(256, _round_up(B, _SUB_B)), _SUB_B)
    B_pad = _round_up(B, TB)
    P_pad = _round_up(P, TP)

    # v7x has two TensorCores: if the grid degenerates to a single step, split
    # the batch tile so both cores get work (no-op on v5e/v6e's single TC).
    if tile_b is None and B_pad // TB == 1 and P_pad // TP == 1 and TB > _SUB_B:
        TB = _round_up(TB // 2, _SUB_B)
        B_pad = _round_up(B, TB)

    # x laid out as [x1 | x2], each half P_pad wide.  Aligned fast path passes
    # x straight through (no extra HBM pass); padding only for ragged shapes.
    if B_pad == B and P_pad == P:
        x_in = x
    else:
        x1 = jnp.pad(x[:, :P], ((0, B_pad - B), (0, P_pad - P)))
        x2 = jnp.pad(x[:, P:], ((0, B_pad - B), (0, P_pad - P)))
        x_in = jnp.concatenate([x1, x2], axis=1)

    # alpha (P, D*D) -> (D*D, P_pad): lane axis = P, row i*D+j = alpha[:, i*D+j].
    # TODO(synk): if alpha is a persistent parameter, store it pre-transposed
    # and hoist this out of the forward pass.
    alpha_t = jnp.transpose(alpha)
    if P_pad != P:
        alpha_t = jnp.pad(alpha_t, ((0, 0), (0, P_pad - P)))
    xs_smem = jnp.asarray(xs, jnp.float32).reshape(D)

    kernel = functools.partial(_kaf2d_kernel, gamma=float(gamma), D=D)
    n_pb = P_pad // TP                       # block-column offset of the x2 half

    # P axis outer, B axis inner: the alpha tile (depends only on the P tile)
    # stays resident across the full batch sweep.
    y_pad = pl.pallas_call(
        kernel,
        out_shape=jax.ShapeDtypeStruct((B_pad, P_pad), x.dtype),
        grid=(P_pad // TP, B_pad // TB),
        in_specs=[
            pl.BlockSpec(memory_space=pltpu.MemorySpace.SMEM),         # xs (scalars)
            pl.BlockSpec((TB, TP), lambda jp, ib: (ib, jp)),           # x1 half of x_in
            pl.BlockSpec((TB, TP), lambda jp, ib: (ib, jp + n_pb)),    # x2 half of x_in
            pl.BlockSpec((D * D, TP), lambda jp, ib: (0, jp)),         # alpha_t
        ],
        out_specs=pl.BlockSpec((TB, TP), lambda jp, ib: (ib, jp)),
        compiler_params=pltpu.CompilerParams(
            dimension_semantics=("parallel", "parallel")),
    )(xs_smem, x_in, x_in, alpha_t)

    return y_pad[:B, :P]


def make_kaf2d_params(num_parameters, D=10, boundary=3.0, key=None):
    """Deterministic parameter / buffer construction mirroring KAF2D.__init__."""
    if num_parameters % 2 != 0:
        raise ValueError("The number of parameters for KAF2D must be even.")
    P = num_parameters // 2
    xs = np.linspace(-boundary, boundary, D).astype(np.float32)
    interval = xs[1] - xs[0]
    sigma = 2.0 * interval / np.sqrt(2.0)
    gamma = 0.5 / sigma ** 2
    # alpha ~ Normal(0, 0.3), shape (P, D*D) (PyTorch (1, P, D*D) squeezed)
    alpha = 0.3 * jax.random.normal(key, (P, D * D), dtype=jnp.float32)
    return jnp.asarray(xs), alpha, float(gamma), P


def kaf2d_reference(x, xs, alpha, gamma):
    """Pure-JAX reference, faithful to the PyTorch (non-separable) formulation."""
    P = alpha.shape[0]
    xs_np = np.asarray(xs)
    Dx, Dy = np.meshgrid(xs_np, xs_np)
    dx = jnp.asarray(Dx.ravel(), jnp.float32)
    dy = jnp.asarray(Dy.ravel(), jnp.float32)
    x1 = x[:, :P]
    x2 = x[:, P:]
    tmp = (-gamma * (x1[:, :, None] - dx[None, None, :]) ** 2
           - gamma * (x2[:, :, None] - dy[None, None, :]) ** 2)
    return jnp.sum(jnp.exp(tmp) * alpha[None, :, :], axis=-1)


if __name__ == "__main__":
    key = jax.random.PRNGKey(0)
    k_alpha, k_x = jax.random.split(key)

    num_parameters = 64      # gets halved -> P = 32 outputs
    D = 10
    batch = 8

    xs, alpha, gamma, P = make_kaf2d_params(num_parameters, D=D, key=k_alpha)
    x = jax.random.normal(k_x, (batch, num_parameters), dtype=jnp.float32)

    y = kaf2d_forward(x, xs, alpha, gamma)
    y = jax.block_until_ready(y)

    y_ref = kaf2d_reference(x, xs, alpha, gamma)
    assert y.shape == (batch, P)
    np.testing.assert_allclose(np.asarray(y), np.asarray(y_ref), rtol=1e-4, atol=2e-5)

    print("KERNEL_OK")
</pallas_src>

<mosaic_0001>
module attributes {stable_mosaic.version = 11 : i64} {
  func.func @_kaf2d_kernel(%arg0: i32, %arg1: i32, %arg2: memref<10xf32, #tpu.memory_space<smem>>, %arg3: memref<8x128xf32, #tpu.memory_space<vmem>>, %arg4: memref<8x128xf32, #tpu.memory_space<vmem>>, %arg5: memref<100x128xf32, #tpu.memory_space<vmem>>, %arg6: memref<8x128xf32, #tpu.memory_space<vmem>>) attributes {dimension_semantics = [#tpu.dimension_semantics<parallel>, #tpu.dimension_semantics<parallel>], iteration_bounds = array<i64: 1, 1>, scalar_prefetch = 0 : i64, scratch_operands = 0 : i64, tpu.core_type = #tpu.core_type<tc>, window_params = [{transform_indices = @transform_0, window_bounds = array<i64: 10>}, {transform_indices = @transform_1, window_bounds = array<i64: 8, 128>}, {transform_indices = @transform_2, window_bounds = array<i64: 8, 128>}, {transform_indices = @transform_3, window_bounds = array<i64: 100, 128>}, {transform_indices = @transform_4, window_bounds = array<i64: 8, 128>}]} {
    %cst = arith.constant -0.562499881 : f32
    %c0_i32 = arith.constant 0 : i32
    %c1_i32 = arith.constant 1 : i32
    %0 = arith.muli %c0_i32, %c1_i32 : i32
    %c0_i32_0 = arith.constant 0 : i32
    %1 = arith.addi %c0_i32_0, %0 : i32
    %c8_i32 = arith.constant 8 : i32
    %2 = arith.muli %1, %c8_i32 : i32
    %3 = tpu.assume_multiple %2, 8 : i32
    %4 = arith.index_cast %3 : i32 to index
    %c0 = arith.constant 0 : index
    %5 = vector.load %arg3[%4, %c0] : memref<8x128xf32, #tpu.memory_space<vmem>>, vector<8x128xf32>
    %6 = arith.index_cast %3 : i32 to index
    %c0_1 = arith.constant 0 : index
    %7 = vector.load %arg4[%6, %c0_1] : memref<8x128xf32, #tpu.memory_space<vmem>>, vector<8x128xf32>
    %c0_2 = arith.constant 0 : index
    %8 = memref.load %arg2[%c0_2] : memref<10xf32, #tpu.memory_space<smem>>
    %9 = vector.broadcast %8 : f32 to vector<8x128xf32>
    %10 = arith.subf %5, %9 : vector<8x128xf32>
    %11 = arith.mulf %10, %10 : vector<8x128xf32>
    %12 = vector.broadcast %cst : f32 to vector<8x128xf32>
    %13 = arith.mulf %12, %11 : vector<8x128xf32>
    %14 = math.exp %13 : vector<8x128xf32>
    %c1 = arith.constant 1 : index
    %15 = memref.load %arg2[%c1] : memref<10xf32, #tpu.memory_space<smem>>
    %16 = vector.broadcast %15 : f32 to vector<8x128xf32>
    %17 = arith.subf %5, %16 : vector<8x128xf32>
    %18 = arith.mulf %17, %17 : vector<8x128xf32>
    %19 = vector.broadcast %cst : f32 to vector<8x128xf32>
    %20 = arith.mulf %19, %18 : vector<8x128xf32>
    %21 = math.exp %20 : vector<8x128xf32>
    %c2 = arith.constant 2 : index
    %22 = memref.load %arg2[%c2] : memref<10xf32, #tpu.memory_space<smem>>
    %23 = vector.broadcast %22 : f32 to vector<8x128xf32>
    %24 = arith.subf %5, %23 : vector<8x128xf32>
    %25 = arith.mulf %24, %24 : vector<8x128xf32>
    %26 = vector.broadcast %cst : f32 to vector<8x128xf32>
    %27 = arith.mulf %26, %25 : vector<8x128xf32>
    %28 = math.exp %27 : vector<8x128xf32>
    %c3 = arith.constant 3 : index
    %29 = memref.load %arg2[%c3] : memref<10xf32, #tpu.memory_space<smem>>
    %30 = vector.broadcast %29 : f32 to vector<8x128xf32>
    %31 = arith.subf %5, %30 : vector<8x128xf32>
    %32 = arith.mulf %31, %31 : vector<8x128xf32>
    %33 = vector.broadcast %cst : f32 to vector<8x128xf32>
    %34 = arith.mulf %33, %32 : vector<8x128xf32>
    %35 = math.exp %34 : vector<8x128xf32>
    %c4 = arith.constant 4 : index
    %36 = memref.load %arg2[%c4] : memref<10xf32, #tpu.memory_space<smem>>
    %37 = vector.broadcast %36 : f32 to vector<8x128xf32>
    %38 = arith.subf %5, %37 : vector<8x128xf32>
    %39 = arith.mulf %38, %38 : vector<8x128xf32>
    %40 = vector.broadcast %cst : f32 to vector<8x128xf32>
    %41 = arith.mulf %40, %39 : vector<8x128xf32>
    %42 = math.exp %41 : vector<8x128xf32>
    %c5 = arith.constant 5 : index
    %43 = memref.load %arg2[%c5] : memref<10xf32, #tpu.memory_space<smem>>
    %44 = vector.broadcast %43 : f32 to vector<8x128xf32>
    %45 = arith.subf %5, %44 : vector<8x128xf32>
    %46 = arith.mulf %45, %45 : vector<8x128xf32>
    %47 = vector.broadcast %cst : f32 to vector<8x128xf32>
    %48 = arith.mulf %47, %46 : vector<8x128xf32>
    %49 = math.exp %48 : vector<8x128xf32>
    %c6 = arith.constant 6 : index
    %50 = memref.load %arg2[%c6] : memref<10xf32, #tpu.memory_space<smem>>
    %51 = vector.broadcast %50 : f32 to vector<8x128xf32>
    %52 = arith.subf %5, %51 : vector<8x128xf32>
    %53 = arith.mulf %52, %52 : vector<8x128xf32>
    %54 = vector.broadcast %cst : f32 to vector<8x128xf32>
    %55 = arith.mulf %54, %53 : vector<8x128xf32>
    %56 = math.exp %55 : vector<8x128xf32>
    %c7 = arith.constant 7 : index
    %57 = memref.load %arg2[%c7] : memref<10xf32, #tpu.memory_space<smem>>
    %58 = vector.broadcast %57 : f32 to vector<8x128xf32>
    %59 = arith.subf %5, %58 : vector<8x128xf32>
    %60 = arith.mulf %59, %59 : vector<8x128xf32>
    %61 = vector.broadcast %cst : f32 to vector<8x128xf32>
    %62 = arith.mulf %61, %60 : vector<8x128xf32>
    %63 = math.exp %62 : vector<8x128xf32>
    %c8 = arith.constant 8 : index
    %64 = memref.load %arg2[%c8] : memref<10xf32, #tpu.memory_space<smem>>
    %65 = vector.broadcast %64 : f32 to vector<8x128xf32>
    %66 = arith.subf %5, %65 : vector<8x128xf32>
    %67 = arith.mulf %66, %66 : vector<8x128xf32>
    %68 = vector.broadcast %cst : f32 to vector<8x128xf32>
    %69 = arith.mulf %68, %67 : vector<8x128xf32>
    %70 = math.exp %69 : vector<8x128xf32>
    %c9 = arith.constant 9 : index
    %71 = memref.load %arg2[%c9] : memref<10xf32, #tpu.memory_space<smem>>
    %72 = vector.broadcast %71 : f32 to vector<8x128xf32>
    %73 = arith.subf %5, %72 : vector<8x128xf32>
    %74 = arith.mulf %73, %73 : vector<8x128xf32>
    %75 = vector.broadcast %cst : f32 to vector<8x128xf32>
    %76 = arith.mulf %75, %74 : vector<8x128xf32>
    %77 = math.exp %76 : vector<8x128xf32>
    %cst_3 = arith.constant 0.000000e+00 : f32
    %78 = vector.broadcast %cst_3 : f32 to vector<8x128xf32>
    %c0_4 = arith.constant 0 : index
    %79 = memref.load %arg2[%c0_4] : memref<10xf32, #tpu.memory_space<smem>>
    %80 = vector.broadcast %79 : f32 to vector<8x128xf32>
    %81 = arith.subf %7, %80 : vector<8x128xf32>
    %82 = arith.mulf %81, %81 : vector<8x128xf32>
    %83 = vector.broadcast %cst : f32 to vector<8x128xf32>
    %84 = arith.mulf %83, %82 : vector<8x128xf32>
    %85 = math.exp %84 : vector<8x128xf32>
    %cst_5 = arith.constant 0.000000e+00 : f32
    %86 = vector.broadcast %cst_5 : f32 to vector<8x128xf32>
    %c0_6 = arith.constant 0 : index
    %c0_7 = arith.constant 0 : index
    %87 = vector.load %arg5[%c0_6, %c0_7] : memref<100x128xf32, #tpu.memory_space<vmem>>, vector<1x128xf32>
    %88 = vector.shape_cast %87 : vector<1x128xf32> to vector<128xf32>
    %89 = vector.shape_cast %88 : vector<128xf32> to vector<1x128xf32>
    %90 = vector.broadcast %89 : vector<1x128xf32> to vector<8x128xf32>
    %91 = arith.mulf %90, %14 : vector<8x128xf32>
    %92 = arith.addf %86, %91 : vector<8x128xf32>
    %c1_8 = arith.constant 1 : index
    %c0_9 = arith.constant 0 : index
    %93 = vector.load %arg5[%c1_8, %c0_9] : memref<100x128xf32, #tpu.memory_space<vmem>>, vector<1x128xf32>
    %94 = vector.shape_cast %93 : vector<1x128xf32> to vector<128xf32>
    %95 = vector.shape_cast %94 : vector<128xf32> to vector<1x128xf32>
    %96 = vector.broadcast %95 : vector<1x128xf32> to vector<8x128xf32>
    %97 = arith.mulf %96, %21 : vector<8x128xf32>
    %98 = arith.addf %92, %97 : vector<8x128xf32>
    %c2_10 = arith.constant 2 : index
    %c0_11 = arith.constant 0 : index
    %99 = vector.load %arg5[%c2_10, %c0_11] : memref<100x128xf32, #tpu.memory_space<vmem>>, vector<1x128xf32>
    %100 = vector.shape_cast %99 : vector<1x128xf32> to vector<128xf32>
    %101 = vector.shape_cast %100 : vector<128xf32> to vector<1x128xf32>
    %102 = vector.broadcast %101 : vector<1x128xf32> to vector<8x128xf32>
    %103 = arith.mulf %102, %28 : vector<8x128xf32>
    %104 = arith.addf %98, %103 : vector<8x128xf32>
    %c3_12 = arith.constant 3 : index
    %c0_13 = arith.constant 0 : index
    %105 = vector.load %arg5[%c3_12, %c0_13] : memref<100x128xf32, #tpu.memory_space<vmem>>, vector<1x128xf32>
    %106 = vector.shape_cast %105 : vector<1x128xf32> to vector<128xf32>
    %107 = vector.shape_cast %106 : vector<128xf32> to vector<1x128xf32>
    %108 = vector.broadcast %107 : vector<1x128xf32> to vector<8x128xf32>
    %109 = arith.mulf %108, %35 : vector<8x128xf32>
    %110 = arith.addf %104, %109 : vector<8x128xf32>
    %c4_14 = arith.constant 4 : index
    %c0_15 = arith.constant 0 : index
    %111 = vector.load %arg5[%c4_14, %c0_15] : memref<100x128xf32, #tpu.memory_space<vmem>>, vector<1x128xf32>
    %112 = vector.shape_cast %111 : vector<1x128xf32> to vector<128xf32>
    %113 = vector.shape_cast %112 : vector<128xf32> to vector<1x128xf32>
    %114 = vector.broadcast %113 : vector<1x128xf32> to vector<8x128xf32>
    %115 = arith.mulf %114, %42 : vector<8x128xf32>
    %116 = arith.addf %110, %115 : vector<8x128xf32>
    %c5_16 = arith.constant 5 : index
    %c0_17 = arith.constant 0 : index
    %117 = vector.load %arg5[%c5_16, %c0_17] : memref<100x128xf32, #tpu.memory_space<vmem>>, vector<1x128xf32>
    %118 = vector.shape_cast %117 : vector<1x128xf32> to vector<128xf32>
    %119 = vector.shape_cast %118 : vector<128xf32> to vector<1x128xf32>
    %120 = vector.broadcast %119 : vector<1x128xf32> to vector<8x128xf32>
    %121 = arith.mulf %120, %49 : vector<8x128xf32>
    %122 = arith.addf %116, %121 : vector<8x128xf32>
    %c6_18 = arith.constant 6 : index
    %c0_19 = arith.constant 0 : index
    %123 = vector.load %arg5[%c6_18, %c0_19] : memref<100x128xf32, #tpu.memory_space<vmem>>, vector<1x128xf32>
    %124 = vector.shape_cast %123 : vector<1x128xf32> to vector<128xf32>
    %125 = vector.shape_cast %124 : vector<128xf32> to vector<1x128xf32>
    %126 = vector.broadcast %125 : vector<1x128xf32> to vector<8x128xf32>
    %127 = arith.mulf %126, %56 : vector<8x128xf32>
    %128 = arith.addf %122, %127 : vector<8x128xf32>
    %c7_20 = arith.constant 7 : index
    %c0_21 = arith.constant 0 : index
    %129 = vector.load %arg5[%c7_20, %c0_21] : memref<100x128xf32, #tpu.memory_space<vmem>>, vector<1x128xf32>
    %130 = vector.shape_cast %129 : vector<1x128xf32> to vector<128xf32>
    %131 = vector.shape_cast %130 : vector<128xf32> to vector<1x128xf32>
    %132 = vector.broadcast %131 : vector<1x128xf32> to vector<8x128xf32>
    %133 = arith.mulf %132, %63 : vector<8x128xf32>
    %134 = arith.addf %128, %133 : vector<8x128xf32>
    %c8_22 = arith.constant 8 : index
    %c0_23 = arith.constant 0 : index
    %135 = vector.load %arg5[%c8_22, %c0_23] : memref<100x128xf32, #tpu.memory_space<vmem>>, vector<1x128xf32>
    %136 = vector.shape_cast %135 : vector<1x128xf32> to vector<128xf32>
    %137 = vector.shape_cast %136 : vector<128xf32> to vector<1x128xf32>
    %138 = vector.broadcast %137 : vector<1x128xf32> to vector<8x128xf32>
    %139 = arith.mulf %138, %70 : vector<8x128xf32>
    %140 = arith.addf %134, %139 : vector<8x128xf32>
    %c9_24 = arith.constant 9 : index
    %c0_25 = arith.constant 0 : index
    %141 = vector.load %arg5[%c9_24, %c0_25] : memref<100x128xf32, #tpu.memory_space<vmem>>, vector<1x128xf32>
    %142 = vector.shape_cast %141 : vector<1x128xf32> to vector<128xf32>
    %143 = vector.shape_cast %142 : vector<128xf32> to vector<1x128xf32>
    %144 = vector.broadcast %143 : vector<1x128xf32> to vector<8x128xf32>
    %145 = arith.mulf %144, %77 : vector<8x128xf32>
    %146 = arith.addf %140, %145 : vector<8x128xf32>
    %147 = arith.mulf %85, %146 : vector<8x128xf32>
    %148 = arith.addf %78, %147 : vector<8x128xf32>
    %c1_26 = arith.constant 1 : index
    %149 = memref.load %arg2[%c1_26] : memref<10xf32, #tpu.memory_space<smem>>
    %150 = vector.broadcast %149 : f32 to vector<8x128xf32>
    %151 = arith.subf %7, %150 : vector<8x128xf32>
    %152 = arith.mulf %151, %151 : vector<8x128xf32>
    %153 = vector.broadcast %cst : f32 to vector<8x128xf32>
    %154 = arith.mulf %153, %152 : vector<8x128xf32>
    %155 = math.exp %154 : vector<8x128xf32>
    %cst_27 = arith.constant 0.000000e+00 : f32
    %156 = vector.broadcast %cst_27 : f32 to vector<8x128xf32>
    %c10 = arith.constant 10 : index
    %c0_28 = arith.constant 0 : index
    %157 = vector.load %arg5[%c10, %c0_28] : memref<100x128xf32, #tpu.memory_space<vmem>>, vector<1x128xf32>
    %158 = vector.shape_cast %157 : vector<1x128xf32> to vector<128xf32>
    %159 = vector.shape_cast %158 : vector<128xf32> to vector<1x128xf32>
    %160 = vector.broadcast %159 : vector<1x128xf32> to vector<8x128xf32>
    %161 = arith.mulf %160, %14 : vector<8x128xf32>
    %162 = arith.addf %156, %161 : vector<8x128xf32>
    %c11 = arith.constant 11 : index
    %c0_29 = arith.constant 0 : index
    %163 = vector.load %arg5[%c11, %c0_29] : memref<100x128xf32, #tpu.memory_space<vmem>>, vector<1x128xf32>
    %164 = vector.shape_cast %163 : vector<1x128xf32> to vector<128xf32>
    %165 = vector.shape_cast %164 : vector<128xf32> to vector<1x128xf32>
    %166 = vector.broadcast %165 : vector<1x128xf32> to vector<8x128xf32>
    %167 = arith.mulf %166, %21 : vector<8x128xf32>
    %168 = arith.addf %162, %167 : vector<8x128xf32>
    %c12 = arith.constant 12 : index
    %c0_30 = arith.constant 0 : index
    %169 = vector.load %arg5[%c12, %c0_30] : memref<100x128xf32, #tpu.memory_space<vmem>>, vector<1x128xf32>
    %170 = vector.shape_cast %169 : vector<1x128xf32> to vector<128xf32>
    %171 = vector.shape_cast %170 : vector<128xf32> to vector<1x128xf32>
    %172 = vector.broadcast %171 : vector<1x128xf32> to vector<8x128xf32>
    %173 = arith.mulf %172, %28 : vector<8x128xf32>
    %174 = arith.addf %168, %173 : vector<8x128xf32>
    %c13 = arith.constant 13 : index
    %c0_31 = arith.constant 0 : index
    %175 = vector.load %arg5[%c13, %c0_31] : memref<100x128xf32, #tpu.memory_space<vmem>>, vector<1x128xf32>
    %176 = vector.shape_cast %175 : vector<1x128xf32> to vector<128xf32>
    %177 = vector.shape_cast %176 : vector<128xf32> to vector<1x128xf32>
    %178 = vector.broadcast %177 : vector<1x128xf32> to vector<8x128xf32>
    %179 = arith.mulf %178, %35 : vector<8x128xf32>
    %180 = arith.addf %174, %179 : vector<8x128xf32>
    %c14 = arith.constant 14 : index
    %c0_32 = arith.constant 0 : index
    %181 = vector.load %arg5[%c14, %c0_32] : memref<100x128xf32, #tpu.memory_space<vmem>>, vector<1x128xf32>
    %182 = vector.shape_cast %181 : vector<1x128xf32> to vector<128xf32>
    %183 = vector.shape_cast %182 : vector<128xf32> to vector<1x128xf32>
    %184 = vector.broadcast %183 : vector<1x128xf32> to vector<8x128xf32>
    %185 = arith.mulf %184, %42 : vector<8x128xf32>
    %186 = arith.addf %180, %185 : vector<8x128xf32>
    %c15 = arith.constant 15 : index
    %c0_33 = arith.constant 0 : index
    %187 = vector.load %arg5[%c15, %c0_33] : memref<100x128xf32, #tpu.memory_space<vmem>>, vector<1x128xf32>
    %188 = vector.shape_cast %187 : vector<1x128xf32> to vector<128xf32>
    %189 = vector.shape_cast %188 : vector<128xf32> to vector<1x128xf32>
    %190 = vector.broadcast %189 : vector<1x128xf32> to vector<8x128xf32>
    %191 = arith.mulf %190, %49 : vector<8x128xf32>
    %192 = arith.addf %186, %191 : vector<8x128xf32>
    %c16 = arith.constant 16 : index
    %c0_34 = arith.constant 0 : index
    %193 = vector.load %arg5[%c16, %c0_34] : memref<100x128xf32, #tpu.memory_space<vmem>>, vector<1x128xf32>
    %194 = vector.shape_cast %193 : vector<1x128xf32> to vector<128xf32>
    %195 = vector.shape_cast %194 : vector<128xf32> to vector<1x128xf32>
    %196 = vector.broadcast %195 : vector<1x128xf32> to vector<8x128xf32>
    %197 = arith.mulf %196, %56 : vector<8x128xf32>
    %198 = arith.addf %192, %197 : vector<8x128xf32>
    %c17 = arith.constant 17 : index
    %c0_35 = arith.constant 0 : index
    %199 = vector.load %arg5[%c17, %c0_35] : memref<100x128xf32, #tpu.memory_space<vmem>>, vector<1x128xf32>
    %200 = vector.shape_cast %199 : vector<1x128xf32> to vector<128xf32>
    %201 = vector.shape_cast %200 : vector<128xf32> to vector<1x128xf32>
    %202 = vector.broadcast %201 : vector<1x128xf32> to vector<8x128xf32>
    %203 = arith.mulf %202, %63 : vector<8x128xf32>
    %204 = arith.addf %198, %203 : vector<8x128xf32>
    %c18 = arith.constant 18 : index
    %c0_36 = arith.constant 0 : index
    %205 = vector.load %arg5[%c18, %c0_36] : memref<100x128xf32, #tpu.memory_space<vmem>>, vector<1x128xf32>
    %206 = vector.shape_cast %205 : vector<1x128xf32> to vector<128xf32>
    %207 = vector.shape_cast %206 : vector<128xf32> to vector<1x128xf32>
    %208 = vector.broadcast %207 : vector<1x128xf32> to vector<8x128xf32>
    %209 = arith.mulf %208, %70 : vector<8x128xf32>
    %210 = arith.addf %204, %209 : vector<8x128xf32>
    %c19 = arith.constant 19 : index
    %c0_37 = arith.constant 0 : index
    %211 = vector.load %arg5[%c19, %c0_37] : memref<100x128xf32, #tpu.memory_space<vmem>>, vector<1x128xf32>
    %212 = vector.shape_cast %211 : vector<1x128xf32> to vector<128xf32>
    %213 = vector.shape_cast %212 : vector<128xf32> to vector<1x128xf32>
    %214 = vector.broadcast %213 : vector<1x128xf32> to vector<8x128xf32>
    %215 = arith.mulf %214, %77 : vector<8x128xf32>
    %216 = arith.addf %210, %215 : vector<8x128xf32>
    %217 = arith.mulf %155, %216 : vector<8x128xf32>
    %218 = arith.addf %148, %217 : vector<8x128xf32>
    %c2_38 = arith.constant 2 : index
    %219 = memref.load %arg2[%c2_38] : memref<10xf32, #tpu.memory_space<smem>>
    %220 = vector.broadcast %219 : f32 to vector<8x128xf32>
    %221 = arith.subf %7, %220 : vector<8x128xf32>
    %222 = arith.mulf %221, %221 : vector<8x128xf32>
    %223 = vector.broadcast %cst : f32 to vector<8x128xf32>
    %224 = arith.mulf %223, %222 : vector<8x128xf32>
    %225 = math.exp %224 : vector<8x128xf32>
    %cst_39 = arith.constant 0.000000e+00 : f32
    %226 = vector.broadcast %cst_39 : f32 to vector<8x128xf32>
    %c20 = arith.constant 20 : index
    %c0_40 = arith.constant 0 : index
    %227 = vector.load %arg5[%c20, %c0_40] : memref<100x128xf32, #tpu.memory_space<vmem>>, vector<1x128xf32>
    %228 = vector.shape_cast %227 : vector<1x128xf32> to vector<128xf32>
    %229 = vector.shape_cast %228 : vector<128xf32> to vector<1x128xf32>
    %230 = vector.broadcast %229 : vector<1x128xf32> to vector<8x128xf32>
    %231 = arith.mulf %230, %14 : vector<8x128xf32>
    %232 = arith.addf %226, %231 : vector<8x128xf32>
    %c21 = arith.constant 21 : index
    %c0_41 = arith.constant 0 : index
    %233 = vector.load %arg5[%c21, %c0_41] : memref<100x128xf32, #tpu.memory_space<vmem>>, vector<1x128xf32>
    %234 = vector.shape_cast %233 : vector<1x128xf32> to vector<128xf32>
    %235 = vector.shape_cast %234 : vector<128xf32> to vector<1x128xf32>
    %236 = vector.broadcast %235 : vector<1x128xf32> to vector<8x128xf32>
    %237 = arith.mulf %236, %21 : vector<8x128xf32>
    %238 = arith.addf %232, %237 : vector<8x128xf32>
    %c22 = arith.constant 22 : index
    %c0_42 = arith.constant 0 : index
    %239 = vector.load %arg5[%c22, %c0_42] : memref<100x128xf32, #tpu.memory_space<vmem>>, vector<1x128xf32>
    %240 = vector.shape_cast %239 : vector<1x128xf32> to vector<128xf32>
    %241 = vector.shape_cast %240 : vector<128xf32> to vector<1x128xf32>
    %242 = vector.broadcast %241 : vector<1x128xf32> to vector<8x128xf32>
    %243 = arith.mulf %242, %28 : vector<8x128xf32>
    %244 = arith.addf %238, %243 : vector<8x128xf32>
    %c23 = arith.constant 23 : index
    %c0_43 = arith.constant 0 : index
    %245 = vector.load %arg5[%c23, %c0_43] : memref<100x128xf32, #tpu.memory_space<vmem>>, vector<1x128xf32>
    %246 = vector.shape_cast %245 : vector<1x128xf32> to vector<128xf32>
    %247 = vector.shape_cast %246 : vector<128xf32> to vector<1x128xf32>
    %248 = vector.broadcast %247 : vector<1x128xf32> to vector<8x128xf32>
    %249 = arith.mulf %248, %35 : vector<8x128xf32>
    %250 = arith.addf %244, %249 : vector<8x128xf32>
    %c24 = arith.constant 24 : index
    %c0_44 = arith.constant 0 : index
    %251 = vector.load %arg5[%c24, %c0_44] : memref<100x128xf32, #tpu.memory_space<vmem>>, vector<1x128xf32>
    %252 = vector.shape_cast %251 : vector<1x128xf32> to vector<128xf32>
    %253 = vector.shape_cast %252 : vector<128xf32> to vector<1x128xf32>
    %254 = vector.broadcast %253 : vector<1x128xf32> to vector<8x128xf32>
    %255 = arith.mulf %254, %42 : vector<8x128xf32>
    %256 = arith.addf %250, %255 : vector<8x128xf32>
    %c25 = arith.constant 25 : index
    %c0_45 = arith.constant 0 : index
    %257 = vector.load %arg5[%c25, %c0_45] : memref<100x128xf32, #tpu.memory_space<vmem>>, vector<1x128xf32>
    %258 = vector.shape_cast %257 : vector<1x128xf32> to vector<128xf32>
    %259 = vector.shape_cast %258 : vector<128xf32> to vector<1x128xf32>
    %260 = vector.broadcast %259 : vector<1x128xf32> to vector<8x128xf32>
    %261 = arith.mulf %260, %49 : vector<8x128xf32>
    %262 = arith.addf %256, %261 : vector<8x128xf32>
    %c26 = arith.constant 26 : index
    %c0_46 = arith.constant 0 : index
    %263 = vector.load %arg5[%c26, %c0_46] : memref<100x128xf32, #tpu.memory_space<vmem>>, vector<1x128xf32>
    %264 = vector.shape_cast %263 : vector<1x128xf32> to vector<128xf32>
    %265 = vector.shape_cast %264 : vector<128xf32> to vector<1x128xf32>
    %266 = vector.broadcast %265 : vector<1x128xf32> to vector<8x128xf32>
    %267 = arith.mulf %266, %56 : vector<8x128xf32>
    %268 = arith.addf %262, %267 : vector<8x128xf32>
    %c27 = arith.constant 27 : index
    %c0_47 = arith.constant 0 : index
    %269 = vector.load %arg5[%c27, %c0_47] : memref<100x128xf32, #tpu.memory_space<vmem>>, vector<1x128xf32>
    %270 = vector.shape_cast %269 : vector<1x128xf32> to vector<128xf32>
    %271 = vector.shape_cast %270 : vector<128xf32> to vector<1x128xf32>
    %272 = vector.broadcast %271 : vector<1x128xf32> to vector<8x128xf32>
    %273 = arith.mulf %272, %63 : vector<8x128xf32>
    %274 = arith.addf %268, %273 : vector<8x128xf32>
    %c28 = arith.constant 28 : index
    %c0_48 = arith.constant 0 : index
    %275 = vector.load %arg5[%c28, %c0_48] : memref<100x128xf32, #tpu.memory_space<vmem>>, vector<1x128xf32>
    %276 = vector.shape_cast %275 : vector<1x128xf32> to vector<128xf32>
    %277 = vector.shape_cast %276 : vector<128xf32> to vector<1x128xf32>
    %278 = vector.broadcast %277 : vector<1x128xf32> to vector<8x128xf32>
    %279 = arith.mulf %278, %70 : vector<8x128xf32>
    %280 = arith.addf %274, %279 : vector<8x128xf32>
    %c29 = arith.constant 29 : index
    %c0_49 = arith.constant 0 : index
    %281 = vector.load %arg5[%c29, %c0_49] : memref<100x128xf32, #tpu.memory_space<vmem>>, vector<1x128xf32>
    %282 = vector.shape_cast %281 : vector<1x128xf32> to vector<128xf32>
    %283 = vector.shape_cast %282 : vector<128xf32> to vector<1x128xf32>
    %284 = vector.broadcast %283 : vector<1x128xf32> to vector<8x128xf32>
    %285 = arith.mulf %284, %77 : vector<8x128xf32>
    %286 = arith.addf %280, %285 : vector<8x128xf32>
    %287 = arith.mulf %225, %286 : vector<8x128xf32>
    %288 = arith.addf %218, %287 : vector<8x128xf32>
    %c3_50 = arith.constant 3 : index
    %289 = memref.load %arg2[%c3_50] : memref<10xf32, #tpu.memory_space<smem>>
    %290 = vector.broadcast %289 : f32 to vector<8x128xf32>
    %291 = arith.subf %7, %290 : vector<8x128xf32>
    %292 = arith.mulf %291, %291 : vector<8x128xf32>
    %293 = vector.broadcast %cst : f32 to vector<8x128xf32>
    %294 = arith.mulf %293, %292 : vector<8x128xf32>
    %295 = math.exp %294 : vector<8x128xf32>
    %cst_51 = arith.constant 0.000000e+00 : f32
    %296 = vector.broadcast %cst_51 : f32 to vector<8x128xf32>
    %c30 = arith.constant 30 : index
    %c0_52 = arith.constant 0 : index
    %297 = vector.load %arg5[%c30, %c0_52] : memref<100x128xf32, #tpu.memory_space<vmem>>, vector<1x128xf32>
    %298 = vector.shape_cast %297 : vector<1x128xf32> to vector<128xf32>
    %299 = vector.shape_cast %298 : vector<128xf32> to vector<1x128xf32>
    %300 = vector.broadcast %299 : vector<1x128xf32> to vector<8x128xf32>
    %301 = arith.mulf %300, %14 : vector<8x128xf32>
    %302 = arith.addf %296, %301 : vector<8x128xf32>
    %c31 = arith.constant 31 : index
    %c0_53 = arith.constant 0 : index
    %303 = vector.load %arg5[%c31, %c0_53] : memref<100x128xf32, #tpu.memory_space<vmem>>, vector<1x128xf32>
    %304 = vector.shape_cast %303 : vector<1x128xf32> to vector<128xf32>
    %305 = vector.shape_cast %304 : vector<128xf32> to vector<1x128xf32>
    %306 = vector.broadcast %305 : vector<1x128xf32> to vector<8x128xf32>
    %307 = arith.mulf %306, %21 : vector<8x128xf32>
    %308 = arith.addf %302, %307 : vector<8x128xf32>
    %c32 = arith.constant 32 : index
    %c0_54 = arith.constant 0 : index
    %309 = vector.load %arg5[%c32, %c0_54] : memref<100x128xf32, #tpu.memory_space<vmem>>, vector<1x128xf32>
    %310 = vector.shape_cast %309 : vector<1x128xf32> to vector<128xf32>
    %311 = vector.shape_cast %310 : vector<128xf32> to vector<1x128xf32>
    %312 = vector.broadcast %311 : vector<1x128xf32> to vector<8x128xf32>
    %313 = arith.mulf %312, %28 : vector<8x128xf32>
    %314 = arith.addf %308, %313 : vector<8x128xf32>
    %c33 = arith.constant 33 : index
    %c0_55 = arith.constant 0 : index
    %315 = vector.load %arg5[%c33, %c0_55] : memref<100x128xf32, #tpu.memory_space<vmem>>, vector<1x128xf32>
    %316 = vector.shape_cast %315 : vector<1x128xf32> to vector<128xf32>
    %317 = vector.shape_cast %316 : vector<128xf32> to vector<1x128xf32>
    %318 = vector.broadcast %317 : vector<1x128xf32> to vector<8x128xf32>
    %319 = arith.mulf %318, %35 : vector<8x128xf32>
    %320 = arith.addf %314, %319 : vector<8x128xf32>
    %c34 = arith.constant 34 : index
    %c0_56 = arith.constant 0 : index
    %321 = vector.load %arg5[%c34, %c0_56] : memref<100x128xf32, #tpu.memory_space<vmem>>, vector<1x128xf32>
    %322 = vector.shape_cast %321 : vector<1x128xf32> to vector<128xf32>
    %323 = vector.shape_cast %322 : vector<128xf32> to vector<1x128xf32>
    %324 = vector.broadcast %323 : vector<1x128xf32> to vector<8x128xf32>
    %325 = arith.mulf %324, %42 : vector<8x128xf32>
    %326 = arith.addf %320, %325 : vector<8x128xf32>
    %c35 = arith.constant 35 : index
    %c0_57 = arith.constant 0 : index
    %327 = vector.load %arg5[%c35, %c0_57] : memref<100x128xf32, #tpu.memory_space<vmem>>, vector<1x128xf32>
    %328 = vector.shape_cast %327 : vector<1x128xf32> to vector<128xf32>
    %329 = vector.shape_cast %328 : vector<128xf32> to vector<1x128xf32>
    %330 = vector.broadcast %329 : vector<1x128xf32> to vector<8x128xf32>
    %331 = arith.mulf %330, %49 : vector<8x128xf32>
    %332 = arith.addf %326, %331 : vector<8x128xf32>
    %c36 = arith.constant 36 : index
    %c0_58 = arith.constant 0 : index
    %333 = vector.load %arg5[%c36, %c0_58] : memref<100x128xf32, #tpu.memory_space<vmem>>, vector<1x128xf32>
    %334 = vector.shape_cast %333 : vector<1x128xf32> to vector<128xf32>
    %335 = vector.shape_cast %334 : vector<128xf32> to vector<1x128xf32>
    %336 = vector.broadcast %335 : vector<1x128xf32> to vector<8x128xf32>
    %337 = arith.mulf %336, %56 : vector<8x128xf32>
    %338 = arith.addf %332, %337 : vector<8x128xf32>
    %c37 = arith.constant 37 : index
    %c0_59 = arith.constant 0 : index
    %339 = vector.load %arg5[%c37, %c0_59] : memref<100x128xf32, #tpu.memory_space<vmem>>, vector<1x128xf32>
    %340 = vector.shape_cast %339 : vector<1x128xf32> to vector<128xf32>
    %341 = vector.shape_cast %340 : vector<128xf32> to vector<1x128xf32>
    %342 = vector.broadcast %341 : vector<1x128xf32> to vector<8x128xf32>
    %343 = arith.mulf %342, %63 : vector<8x128xf32>
    %344 = arith.addf %338, %343 : vector<8x128xf32>
    %c38 = arith.constant 38 : index
    %c0_60 = arith.constant 0 : index
    %345 = vector.load %arg5[%c38, %c0_60] : memref<100x128xf32, #tpu.memory_space<vmem>>, vector<1x128xf32>
    %346 = vector.shape_cast %345 : vector<1x128xf32> to vector<128xf32>
    %347 = vector.shape_cast %346 : vector<128xf32> to vector<1x128xf32>
    %348 = vector.broadcast %347 : vector<1x128xf32> to vector<8x128xf32>
    %349 = arith.mulf %348, %70 : vector<8x128xf32>
    %350 = arith.addf %344, %349 : vector<8x128xf32>
    %c39 = arith.constant 39 : index
    %c0_61 = arith.constant 0 : index
    %351 = vector.load %arg5[%c39, %c0_61] : memref<100x128xf32, #tpu.memory_space<vmem>>, vector<1x128xf32>
    %352 = vector.shape_cast %351 : vector<1x128xf32> to vector<128xf32>
    %353 = vector.shape_cast %352 : vector<128xf32> to vector<1x128xf32>
    %354 = vector.broadcast %353 : vector<1x128xf32> to vector<8x128xf32>
    %355 = arith.mulf %354, %77 : vector<8x128xf32>
    %356 = arith.addf %350, %355 : vector<8x128xf32>
    %357 = arith.mulf %295, %356 : vector<8x128xf32>
    %358 = arith.addf %288, %357 : vector<8x128xf32>
    %c4_62 = arith.constant 4 : index
    %359 = memref.load %arg2[%c4_62] : memref<10xf32, #tpu.memory_space<smem>>
    %360 = vector.broadcast %359 : f32 to vector<8x128xf32>
    %361 = arith.subf %7, %360 : vector<8x128xf32>
    %362 = arith.mulf %361, %361 : vector<8x128xf32>
    %363 = vector.broadcast %cst : f32 to vector<8x128xf32>
    %364 = arith.mulf %363, %362 : vector<8x128xf32>
    %365 = math.exp %364 : vector<8x128xf32>
    %cst_63 = arith.constant 0.000000e+00 : f32
    %366 = vector.broadcast %cst_63 : f32 to vector<8x128xf32>
    %c40 = arith.constant 40 : index
    %c0_64 = arith.constant 0 : index
    %367 = vector.load %arg5[%c40, %c0_64] : memref<100x128xf32, #tpu.memory_space<vmem>>, vector<1x128xf32>
    %368 = vector.shape_cast %367 : vector<1x128xf32> to vector<128xf32>
    %369 = vector.shape_cast %368 : vector<128xf32> to vector<1x128xf32>
    %370 = vector.broadcast %369 : vector<1x128xf32> to vector<8x128xf32>
    %371 = arith.mulf %370, %14 : vector<8x128xf32>
    %372 = arith.addf %366, %371 : vector<8x128xf32>
    %c41 = arith.constant 41 : index
    %c0_65 = arith.constant 0 : index
    %373 = vector.load %arg5[%c41, %c0_65] : memref<100x128xf32, #tpu.memory_space<vmem>>, vector<1x128xf32>
    %374 = vector.shape_cast %373 : vector<1x128xf32> to vector<128xf32>
    %375 = vector.shape_cast %374 : vector<128xf32> to vector<1x128xf32>
    %376 = vector.broadcast %375 : vector<1x128xf32> to vector<8x128xf32>
    %377 = arith.mulf %376, %21 : vector<8x128xf32>
    %378 = arith.addf %372, %377 : vector<8x128xf32>
    %c42 = arith.constant 42 : index
    %c0_66 = arith.constant 0 : index
    %379 = vector.load %arg5[%c42, %c0_66] : memref<100x128xf32, #tpu.memory_space<vmem>>, vector<1x128xf32>
    %380 = vector.shape_cast %379 : vector<1x128xf32> to vector<128xf32>
    %381 = vector.shape_cast %380 : vector<128xf32> to vector<1x128xf32>
    %382 = vector.broadcast %381 : vector<1x128xf32> to vector<8x128xf32>
    %383 = arith.mulf %382, %28 : vector<8x128xf32>
    %384 = arith.addf %378, %383 : vector<8x128xf32>
    %c43 = arith.constant 43 : index
    %c0_67 = arith.constant 0 : index
    %385 = vector.load %arg5[%c43, %c0_67] : memref<100x128xf32, #tpu.memory_space<vmem>>, vector<1x128xf32>
    %386 = vector.shape_cast %385 : vector<1x128xf32> to vector<128xf32>
    %387 = vector.shape_cast %386 : vector<128xf32> to vector<1x128xf32>
    %388 = vector.broadcast %387 : vector<1x128xf32> to vector<8x128xf32>
    %389 = arith.mulf %388, %35 : vector<8x128xf32>
    %390 = arith.addf %384, %389 : vector<8x128xf32>
    %c44 = arith.constant 44 : index
    %c0_68 = arith.constant 0 : index
    %391 = vector.load %arg5[%c44, %c0_68] : memref<100x128xf32, #tpu.memory_space<vmem>>, vector<1x128xf32>
    %392 = vector.shape_cast %391 : vector<1x128xf32> to vector<128xf32>
    %393 = vector.shape_cast %392 : vector<128xf32> to vector<1x128xf32>
    %394 = vector.broadcast %393 : vector<1x128xf32> to vector<8x128xf32>
    %395 = arith.mulf %394, %42 : vector<8x128xf32>
    %396 = arith.addf %390, %395 : vector<8x128xf32>
    %c45 = arith.constant 45 : index
    %c0_69 = arith.constant 0 : index
    %397 = vector.load %arg5[%c45, %c0_69] : memref<100x128xf32, #tpu.memory_space<vmem>>, vector<1x128xf32>
    %398 = vector.shape_cast %397 : vector<1x128xf32> to vector<128xf32>
    %399 = vector.shape_cast %398 : vector<128xf32> to vector<1x128xf32>
    %400 = vector.broadcast %399 : vector<1x128xf32> to vector<8x128xf32>
    %401 = arith.mulf %400, %49 : vector<8x128xf32>
    %402 = arith.addf %396, %401 : vector<8x128xf32>
    %c46 = arith.constant 46 : index
    %c0_70 = arith.constant 0 : index
    %403 = vector.load %arg5[%c46, %c0_70] : memref<100x128xf32, #tpu.memory_space<vmem>>, vector<1x128xf32>
    %404 = vector.shape_cast %403 : vector<1x128xf32> to vector<128xf32>
    %405 = vector.shape_cast %404 : vector<128xf32> to vector<1x128xf32>
    %406 = vector.broadcast %405 : vector<1x128xf32> to vector<8x128xf32>
    %407 = arith.mulf %406, %56 : vector<8x128xf32>
    %408 = arith.addf %402, %407 : vector<8x128xf32>
    %c47 = arith.constant 47 : index
    %c0_71 = arith.constant 0 : index
    %409 = vector.load %arg5[%c47, %c0_71] : memref<100x128xf32, #tpu.memory_space<vmem>>, vector<1x128xf32>
    %410 = vector.shape_cast %409 : vector<1x128xf32> to vector<128xf32>
    %411 = vector.shape_cast %410 : vector<128xf32> to vector<1x128xf32>
    %412 = vector.broadcast %411 : vector<1x128xf32> to vector<8x128xf32>
    %413 = arith.mulf %412, %63 : vector<8x128xf32>
    %414 = arith.addf %408, %413 : vector<8x128xf32>
    %c48 = arith.constant 48 : index
    %c0_72 = arith.constant 0 : index
    %415 = vector.load %arg5[%c48, %c0_72] : memref<100x128xf32, #tpu.memory_space<vmem>>, vector<1x128xf32>
    %416 = vector.shape_cast %415 : vector<1x128xf32> to vector<128xf32>
    %417 = vector.shape_cast %416 : vector<128xf32> to vector<1x128xf32>
    %418 = vector.broadcast %417 : vector<1x128xf32> to vector<8x128xf32>
    %419 = arith.mulf %418, %70 : vector<8x128xf32>
    %420 = arith.addf %414, %419 : vector<8x128xf32>
    %c49 = arith.constant 49 : index
    %c0_73 = arith.constant 0 : index
    %421 = vector.load %arg5[%c49, %c0_73] : memref<100x128xf32, #tpu.memory_space<vmem>>, vector<1x128xf32>
    %422 = vector.shape_cast %421 : vector<1x128xf32> to vector<128xf32>
    %423 = vector.shape_cast %422 : vector<128xf32> to vector<1x128xf32>
    %424 = vector.broadcast %423 : vector<1x128xf32> to vector<8x128xf32>
    %425 = arith.mulf %424, %77 : vector<8x128xf32>
    %426 = arith.addf %420, %425 : vector<8x128xf32>
    %427 = arith.mulf %365, %426 : vector<8x128xf32>
    %428 = arith.addf %358, %427 : vector<8x128xf32>
    %c5_74 = arith.constant 5 : index
    %429 = memref.load %arg2[%c5_74] : memref<10xf32, #tpu.memory_space<smem>>
    %430 = vector.broadcast %429 : f32 to vector<8x128xf32>
    %431 = arith.subf %7, %430 : vector<8x128xf32>
    %432 = arith.mulf %431, %431 : vector<8x128xf32>
    %433 = vector.broadcast %cst : f32 to vector<8x128xf32>
    %434 = arith.mulf %433, %432 : vector<8x128xf32>
    %435 = math.exp %434 : vector<8x128xf32>
    %cst_75 = arith.constant 0.000000e+00 : f32
    %436 = vector.broadcast %cst_75 : f32 to vector<8x128xf32>
    %c50 = arith.constant 50 : index
    %c0_76 = arith.constant 0 : index
    %437 = vector.load %arg5[%c50, %c0_76] : memref<100x128xf32, #tpu.memory_space<vmem>>, vector<1x128xf32>
    %438 = vector.shape_cast %437 : vector<1x128xf32> to vector<128xf32>
    %439 = vector.shape_cast %438 : vector<128xf32> to vector<1x128xf32>
    %440 = vector.broadcast %439 : vector<1x128xf32> to vector<8x128xf32>
    %441 = arith.mulf %440, %14 : vector<8x128xf32>
    %442 = arith.addf %436, %441 : vector<8x128xf32>
    %c51 = arith.constant 51 : index
    %c0_77 = arith.constant 0 : index
    %443 = vector.load %arg5[%c51, %c0_77] : memref<100x128xf32, #tpu.memory_space<vmem>>, vector<1x128xf32>
    %444 = vector.shape_cast %443 : vector<1x128xf32> to vector<128xf32>
    %445 = vector.shape_cast %444 : vector<128xf32> to vector<1x128xf32>
    %446 = vector.broadcast %445 : vector<1x128xf32> to vector<8x128xf32>
    %447 = arith.mulf %446, %21 : vector<8x128xf32>
    %448 = arith.addf %442, %447 : vector<8x128xf32>
    %c52 = arith.constant 52 : index
    %c0_78 = arith.constant 0 : index
    %449 = vector.load %arg5[%c52, %c0_78] : memref<100x128xf32, #tpu.memory_space<vmem>>, vector<1x128xf32>
    %450 = vector.shape_cast %449 : vector<1x128xf32> to vector<128xf32>
    %451 = vector.shape_cast %450 : vector<128xf32> to vector<1x128xf32>
    %452 = vector.broadcast %451 : vector<1x128xf32> to vector<8x128xf32>
    %453 = arith.mulf %452, %28 : vector<8x128xf32>
    %454 = arith.addf %448, %453 : vector<8x128xf32>
    %c53 = arith.constant 53 : index
    %c0_79 = arith.constant 0 : index
    %455 = vector.load %arg5[%c53, %c0_79] : memref<100x128xf32, #tpu.memory_space<vmem>>, vector<1x128xf32>
    %456 = vector.shape_cast %455 : vector<1x128xf32> to vector<128xf32>
    %457 = vector.shape_cast %456 : vector<128xf32> to vector<1x128xf32>
    %458 = vector.broadcast %457 : vector<1x128xf32> to vector<8x128xf32>
    %459 = arith.mulf %458, %35 : vector<8x128xf32>
    %460 = arith.addf %454, %459 : vector<8x128xf32>
    %c54 = arith.constant 54 : index
    %c0_80 = arith.constant 0 : index
    %461 = vector.load %arg5[%c54, %c0_80] : memref<100x128xf32, #tpu.memory_space<vmem>>, vector<1x128xf32>
    %462 = vector.shape_cast %461 : vector<1x128xf32> to vector<128xf32>
    %463 = vector.shape_cast %462 : vector<128xf32> to vector<1x128xf32>
    %464 = vector.broadcast %463 : vector<1x128xf32> to vector<8x128xf32>
    %465 = arith.mulf %464, %42 : vector<8x128xf32>
    %466 = arith.addf %460, %465 : vector<8x128xf32>
    %c55 = arith.constant 55 : index
    %c0_81 = arith.constant 0 : index
    %467 = vector.load %arg5[%c55, %c0_81] : memref<100x128xf32, #tpu.memory_space<vmem>>, vector<1x128xf32>
    %468 = vector.shape_cast %467 : vector<1x128xf32> to vector<128xf32>
    %469 = vector.shape_cast %468 : vector<128xf32> to vector<1x128xf32>
    %470 = vector.broadcast %469 : vector<1x128xf32> to vector<8x128xf32>
    %471 = arith.mulf %470, %49 : vector<8x128xf32>
    %472 = arith.addf %466, %471 : vector<8x128xf32>
    %c56 = arith.constant 56 : index
    %c0_82 = arith.constant 0 : index
    %473 = vector.load %arg5[%c56, %c0_82] : memref<100x128xf32, #tpu.memory_space<vmem>>, vector<1x128xf32>
    %474 = vector.shape_cast %473 : vector<1x128xf32> to vector<128xf32>
    %475 = vector.shape_cast %474 : vector<128xf32> to vector<1x128xf32>
    %476 = vector.broadcast %475 : vector<1x128xf32> to vector<8x128xf32>
    %477 = arith.mulf %476, %56 : vector<8x128xf32>
    %478 = arith.addf %472, %477 : vector<8x128xf32>
    %c57 = arith.constant 57 : index
    %c0_83 = arith.constant 0 : index
    %479 = vector.load %arg5[%c57, %c0_83] : memref<100x128xf32, #tpu.memory_space<vmem>>, vector<1x128xf32>
    %480 = vector.shape_cast %479 : vector<1x128xf32> to vector<128xf32>
    %481 = vector.shape_cast %480 : vector<128xf32> to vector<1x128xf32>
    %482 = vector.broadcast %481 : vector<1x128xf32> to vector<8x128xf32>
    %483 = arith.mulf %482, %63 : vector<8x128xf32>
    %484 = arith.addf %478, %483 : vector<8x128xf32>
    %c58 = arith.constant 58 : index
    %c0_84 = arith.constant 0 : index
    %485 = vector.load %arg5[%c58, %c0_84] : memref<100x128xf32, #tpu.memory_space<vmem>>, vector<1x128xf32>
    %486 = vector.shape_cast %485 : vector<1x128xf32> to vector<128xf32>
    %487 = vector.shape_cast %486 : vector<128xf32> to vector<1x128xf32>
    %488 = vector.broadcast %487 : vector<1x128xf32> to vector<8x128xf32>
    %489 = arith.mulf %488, %70 : vector<8x128xf32>
    %490 = arith.addf %484, %489 : vector<8x128xf32>
    %c59 = arith.constant 59 : index
    %c0_85 = arith.constant 0 : index
    %491 = vector.load %arg5[%c59, %c0_85] : memref<100x128xf32, #tpu.memory_space<vmem>>, vector<1x128xf32>
    %492 = vector.shape_cast %491 : vector<1x128xf32> to vector<128xf32>
    %493 = vector.shape_cast %492 : vector<128xf32> to vector<1x128xf32>
    %494 = vector.broadcast %493 : vector<1x128xf32> to vector<8x128xf32>
    %495 = arith.mulf %494, %77 : vector<8x128xf32>
    %496 = arith.addf %490, %495 : vector<8x128xf32>
    %497 = arith.mulf %435, %496 : vector<8x128xf32>
    %498 = arith.addf %428, %497 : vector<8x128xf32>
    %c6_86 = arith.constant 6 : index
    %499 = memref.load %arg2[%c6_86] : memref<10xf32, #tpu.memory_space<smem>>
    %500 = vector.broadcast %499 : f32 to vector<8x128xf32>
    %501 = arith.subf %7, %500 : vector<8x128xf32>
    %502 = arith.mulf %501, %501 : vector<8x128xf32>
    %503 = vector.broadcast %cst : f32 to vector<8x128xf32>
    %504 = arith.mulf %503, %502 : vector<8x128xf32>
    %505 = math.exp %504 : vector<8x128xf32>
    %cst_87 = arith.constant 0.000000e+00 : f32
    %506 = vector.broadcast %cst_87 : f32 to vector<8x128xf32>
    %c60 = arith.constant 60 : index
    %c0_88 = arith.constant 0 : index
    %507 = vector.load %arg5[%c60, %c0_88] : memref<100x128xf32, #tpu.memory_space<vmem>>, vector<1x128xf32>
    %508 = vector.shape_cast %507 : vector<1x128xf32> to vector<128xf32>
    %509 = vector.shape_cast %508 : vector<128xf32> to vector<1x128xf32>
    %510 = vector.broadcast %509 : vector<1x128xf32> to vector<8x128xf32>
    %511 = arith.mulf %510, %14 : vector<8x128xf32>
    %512 = arith.addf %506, %511 : vector<8x128xf32>
    %c61 = arith.constant 61 : index
    %c0_89 = arith.constant 0 : index
    %513 = vector.load %arg5[%c61, %c0_89] : memref<100x128xf32, #tpu.memory_space<vmem>>, vector<1x128xf32>
    %514 = vector.shape_cast %513 : vector<1x128xf32> to vector<128xf32>
    %515 = vector.shape_cast %514 : vector<128xf32> to vector<1x128xf32>
    %516 = vector.broadcast %515 : vector<1x128xf32> to vector<8x128xf32>
    %517 = arith.mulf %516, %21 : vector<8x128xf32>
    %518 = arith.addf %512, %517 : vector<8x128xf32>
    %c62 = arith.constant 62 : index
    %c0_90 = arith.constant 0 : index
    %519 = vector.load %arg5[%c62, %c0_90] : memref<100x128xf32, #tpu.memory_space<vmem>>, vector<1x128xf32>
    %520 = vector.shape_cast %519 : vector<1x128xf32> to vector<128xf32>
    %521 = vector.shape_cast %520 : vector<128xf32> to vector<1x128xf32>
    %522 = vector.broadcast %521 : vector<1x128xf32> to vector<8x128xf32>
    %523 = arith.mulf %522, %28 : vector<8x128xf32>
    %524 = arith.addf %518, %523 : vector<8x128xf32>
    %c63 = arith.constant 63 : index
    %c0_91 = arith.constant 0 : index
    %525 = vector.load %arg5[%c63, %c0_91] : memref<100x128xf32, #tpu.memory_space<vmem>>, vector<1x128xf32>
    %526 = vector.shape_cast %525 : vector<1x128xf32> to vector<128xf32>
    %527 = vector.shape_cast %526 : vector<128xf32> to vector<1x128xf32>
    %528 = vector.broadcast %527 : vector<1x128xf32> to vector<8x128xf32>
    %529 = arith.mulf %528, %35 : vector<8x128xf32>
    %530 = arith.addf %524, %529 : vector<8x128xf32>
    %c64 = arith.constant 64 : index
    %c0_92 = arith.constant 0 : index
    %531 = vector.load %arg5[%c64, %c0_92] : memref<100x128xf32, #tpu.memory_space<vmem>>, vector<1x128xf32>
    %532 = vector.shape_cast %531 : vector<1x128xf32> to vector<128xf32>
    %533 = vector.shape_cast %532 : vector<128xf32> to vector<1x128xf32>
    %534 = vector.broadcast %533 : vector<1x128xf32> to vector<8x128xf32>
    %535 = arith.mulf %534, %42 : vector<8x128xf32>
    %536 = arith.addf %530, %535 : vector<8x128xf32>
    %c65 = arith.constant 65 : index
    %c0_93 = arith.constant 0 : index
    %537 = vector.load %arg5[%c65, %c0_93] : memref<100x128xf32, #tpu.memory_space<vmem>>, vector<1x128xf32>
    %538 = vector.shape_cast %537 : vector<1x128xf32> to vector<128xf32>
    %539 = vector.shape_cast %538 : vector<128xf32> to vector<1x128xf32>
    %540 = vector.broadcast %539 : vector<1x128xf32> to vector<8x128xf32>
    %541 = arith.mulf %540, %49 : vector<8x128xf32>
    %542 = arith.addf %536, %541 : vector<8x128xf32>
    %c66 = arith.constant 66 : index
    %c0_94 = arith.constant 0 : index
    %543 = vector.load %arg5[%c66, %c0_94] : memref<100x128xf32, #tpu.memory_space<vmem>>, vector<1x128xf32>
    %544 = vector.shape_cast %543 : vector<1x128xf32> to vector<128xf32>
    %545 = vector.shape_cast %544 : vector<128xf32> to vector<1x128xf32>
    %546 = vector.broadcast %545 : vector<1x128xf32> to vector<8x128xf32>
    %547 = arith.mulf %546, %56 : vector<8x128xf32>
    %548 = arith.addf %542, %547 : vector<8x128xf32>
    %c67 = arith.constant 67 : index
    %c0_95 = arith.constant 0 : index
    %549 = vector.load %arg5[%c67, %c0_95] : memref<100x128xf32, #tpu.memory_space<vmem>>, vector<1x128xf32>
    %550 = vector.shape_cast %549 : vector<1x128xf32> to vector<128xf32>
    %551 = vector.shape_cast %550 : vector<128xf32> to vector<1x128xf32>
    %552 = vector.broadcast %551 : vector<1x128xf32> to vector<8x128xf32>
    %553 = arith.mulf %552, %63 : vector<8x128xf32>
    %554 = arith.addf %548, %553 : vector<8x128xf32>
    %c68 = arith.constant 68 : index
    %c0_96 = arith.constant 0 : index
    %555 = vector.load %arg5[%c68, %c0_96] : memref<100x128xf32, #tpu.memory_space<vmem>>, vector<1x128xf32>
    %556 = vector.shape_cast %555 : vector<1x128xf32> to vector<128xf32>
    %557 = vector.shape_cast %556 : vector<128xf32> to vector<1x128xf32>
    %558 = vector.broadcast %557 : vector<1x128xf32> to vector<8x128xf32>
    %559 = arith.mulf %558, %70 : vector<8x128xf32>
    %560 = arith.addf %554, %559 : vector<8x128xf32>
    %c69 = arith.constant 69 : index
    %c0_97 = arith.constant 0 : index
    %561 = vector.load %arg5[%c69, %c0_97] : memref<100x128xf32, #tpu.memory_space<vmem>>, vector<1x128xf32>
    %562 = vector.shape_cast %561 : vector<1x128xf32> to vector<128xf32>
    %563 = vector.shape_cast %562 : vector<128xf32> to vector<1x128xf32>
    %564 = vector.broadcast %563 : vector<1x128xf32> to vector<8x128xf32>
    %565 = arith.mulf %564, %77 : vector<8x128xf32>
    %566 = arith.addf %560, %565 : vector<8x128xf32>
    %567 = arith.mulf %505, %566 : vector<8x128xf32>
    %568 = arith.addf %498, %567 : vector<8x128xf32>
    %c7_98 = arith.constant 7 : index
    %569 = memref.load %arg2[%c7_98] : memref<10xf32, #tpu.memory_space<smem>>
    %570 = vector.broadcast %569 : f32 to vector<8x128xf32>
    %571 = arith.subf %7, %570 : vector<8x128xf32>
    %572 = arith.mulf %571, %571 : vector<8x128xf32>
    %573 = vector.broadcast %cst : f32 to vector<8x128xf32>
    %574 = arith.mulf %573, %572 : vector<8x128xf32>
    %575 = math.exp %574 : vector<8x128xf32>
    %cst_99 = arith.constant 0.000000e+00 : f32
    %576 = vector.broadcast %cst_99 : f32 to vector<8x128xf32>
    %c70 = arith.constant 70 : index
    %c0_100 = arith.constant 0 : index
    %577 = vector.load %arg5[%c70, %c0_100] : memref<100x128xf32, #tpu.memory_space<vmem>>, vector<1x128xf32>
    %578 = vector.shape_cast %577 : vector<1x128xf32> to vector<128xf32>
    %579 = vector.shape_cast %578 : vector<128xf32> to vector<1x128xf32>
    %580 = vector.broadcast %579 : vector<1x128xf32> to vector<8x128xf32>
    %581 = arith.mulf %580, %14 : vector<8x128xf32>
    %582 = arith.addf %576, %581 : vector<8x128xf32>
    %c71 = arith.constant 71 : index
    %c0_101 = arith.constant 0 : index
    %583 = vector.load %arg5[%c71, %c0_101] : memref<100x128xf32, #tpu.memory_space<vmem>>, vector<1x128xf32>
    %584 = vector.shape_cast %583 : vector<1x128xf32> to vector<128xf32>
    %585 = vector.shape_cast %584 : vector<128xf32> to vector<1x128xf32>
    %586 = vector.broadcast %585 : vector<1x128xf32> to vector<8x128xf32>
    %587 = arith.mulf %586, %21 : vector<8x128xf32>
    %588 = arith.addf %582, %587 : vector<8x128xf32>
    %c72 = arith.constant 72 : index
    %c0_102 = arith.constant 0 : index
    %589 = vector.load %arg5[%c72, %c0_102] : memref<100x128xf32, #tpu.memory_space<vmem>>, vector<1x128xf32>
    %590 = vector.shape_cast %589 : vector<1x128xf32> to vector<128xf32>
    %591 = vector.shape_cast %590 : vector<128xf32> to vector<1x128xf32>
    %592 = vector.broadcast %591 : vector<1x128xf32> to vector<8x128xf32>
    %593 = arith.mulf %592, %28 : vector<8x128xf32>
    %594 = arith.addf %588, %593 : vector<8x128xf32>
    %c73 = arith.constant 73 : index
    %c0_103 = arith.constant 0 : index
    %595 = vector.load %arg5[%c73, %c0_103] : memref<100x128xf32, #tpu.memory_space<vmem>>, vector<1x128xf32>
    %596 = vector.shape_cast %595 : vector<1x128xf32> to vector<128xf32>
    %597 = vector.shape_cast %596 : vector<128xf32> to vector<1x128xf32>
    %598 = vector.broadcast %597 : vector<1x128xf32> to vector<8x128xf32>
    %599 = arith.mulf %598, %35 : vector<8x128xf32>
    %600 = arith.addf %594, %599 : vector<8x128xf32>
    %c74 = arith.constant 74 : index
    %c0_104 = arith.constant 0 : index
    %601 = vector.load %arg5[%c74, %c0_104] : memref<100x128xf32, #tpu.memory_space<vmem>>, vector<1x128xf32>
    %602 = vector.shape_cast %601 : vector<1x128xf32> to vector<128xf32>
    %603 = vector.shape_cast %602 : vector<128xf32> to vector<1x128xf32>
    %604 = vector.broadcast %603 : vector<1x128xf32> to vector<8x128xf32>
    %605 = arith.mulf %604, %42 : vector<8x128xf32>
    %606 = arith.addf %600, %605 : vector<8x128xf32>
    %c75 = arith.constant 75 : index
    %c0_105 = arith.constant 0 : index
    %607 = vector.load %arg5[%c75, %c0_105] : memref<100x128xf32, #tpu.memory_space<vmem>>, vector<1x128xf32>
    %608 = vector.shape_cast %607 : vector<1x128xf32> to vector<128xf32>
    %609 = vector.shape_cast %608 : vector<128xf32> to vector<1x128xf32>
    %610 = vector.broadcast %609 : vector<1x128xf32> to vector<8x128xf32>
    %611 = arith.mulf %610, %49 : vector<8x128xf32>
    %612 = arith.addf %606, %611 : vector<8x128xf32>
    %c76 = arith.constant 76 : index
    %c0_106 = arith.constant 0 : index
    %613 = vector.load %arg5[%c76, %c0_106] : memref<100x128xf32, #tpu.memory_space<vmem>>, vector<1x128xf32>
    %614 = vector.shape_cast %613 : vector<1x128xf32> to vector<128xf32>
    %615 = vector.shape_cast %614 : vector<128xf32> to vector<1x128xf32>
    %616 = vector.broadcast %615 : vector<1x128xf32> to vector<8x128xf32>
    %617 = arith.mulf %616, %56 : vector<8x128xf32>
    %618 = arith.addf %612, %617 : vector<8x128xf32>
    %c77 = arith.constant 77 : index
    %c0_107 = arith.constant 0 : index
    %619 = vector.load %arg5[%c77, %c0_107] : memref<100x128xf32, #tpu.memory_space<vmem>>, vector<1x128xf32>
    %620 = vector.shape_cast %619 : vector<1x128xf32> to vector<128xf32>
    %621 = vector.shape_cast %620 : vector<128xf32> to vector<1x128xf32>
    %622 = vector.broadcast %621 : vector<1x128xf32> to vector<8x128xf32>
    %623 = arith.mulf %622, %63 : vector<8x128xf32>
    %624 = arith.addf %618, %623 : vector<8x128xf32>
    %c78 = arith.constant 78 : index
    %c0_108 = arith.constant 0 : index
    %625 = vector.load %arg5[%c78, %c0_108] : memref<100x128xf32, #tpu.memory_space<vmem>>, vector<1x128xf32>
    %626 = vector.shape_cast %625 : vector<1x128xf32> to vector<128xf32>
    %627 = vector.shape_cast %626 : vector<128xf32> to vector<1x128xf32>
    %628 = vector.broadcast %627 : vector<1x128xf32> to vector<8x128xf32>
    %629 = arith.mulf %628, %70 : vector<8x128xf32>
    %630 = arith.addf %624, %629 : vector<8x128xf32>
    %c79 = arith.constant 79 : index
    %c0_109 = arith.constant 0 : index
    %631 = vector.load %arg5[%c79, %c0_109] : memref<100x128xf32, #tpu.memory_space<vmem>>, vector<1x128xf32>
    %632 = vector.shape_cast %631 : vector<1x128xf32> to vector<128xf32>
    %633 = vector.shape_cast %632 : vector<128xf32> to vector<1x128xf32>
    %634 = vector.broadcast %633 : vector<1x128xf32> to vector<8x128xf32>
    %635 = arith.mulf %634, %77 : vector<8x128xf32>
    %636 = arith.addf %630, %635 : vector<8x128xf32>
    %637 = arith.mulf %575, %636 : vector<8x128xf32>
    %638 = arith.addf %568, %637 : vector<8x128xf32>
    %c8_110 = arith.constant 8 : index
    %639 = memref.load %arg2[%c8_110] : memref<10xf32, #tpu.memory_space<smem>>
    %640 = vector.broadcast %639 : f32 to vector<8x128xf32>
    %641 = arith.subf %7, %640 : vector<8x128xf32>
    %642 = arith.mulf %641, %641 : vector<8x128xf32>
    %643 = vector.broadcast %cst : f32 to vector<8x128xf32>
    %644 = arith.mulf %643, %642 : vector<8x128xf32>
    %645 = math.exp %644 : vector<8x128xf32>
    %cst_111 = arith.constant 0.000000e+00 : f32
    %646 = vector.broadcast %cst_111 : f32 to vector<8x128xf32>
    %c80 = arith.constant 80 : index
    %c0_112 = arith.constant 0 : index
    %647 = vector.load %arg5[%c80, %c0_112] : memref<100x128xf32, #tpu.memory_space<vmem>>, vector<1x128xf32>
    %648 = vector.shape_cast %647 : vector<1x128xf32> to vector<128xf32>
    %649 = vector.shape_cast %648 : vector<128xf32> to vector<1x128xf32>
    %650 = vector.broadcast %649 : vector<1x128xf32> to vector<8x128xf32>
    %651 = arith.mulf %650, %14 : vector<8x128xf32>
    %652 = arith.addf %646, %651 : vector<8x128xf32>
    %c81 = arith.constant 81 : index
    %c0_113 = arith.constant 0 : index
    %653 = vector.load %arg5[%c81, %c0_113] : memref<100x128xf32, #tpu.memory_space<vmem>>, vector<1x128xf32>
    %654 = vector.shape_cast %653 : vector<1x128xf32> to vector<128xf32>
    %655 = vector.shape_cast %654 : vector<128xf32> to vector<1x128xf32>
    %656 = vector.broadcast %655 : vector<1x128xf32> to vector<8x128xf32>
    %657 = arith.mulf %656, %21 : vector<8x128xf32>
    %658 = arith.addf %652, %657 : vector<8x128xf32>
    %c82 = arith.constant 82 : index
    %c0_114 = arith.constant 0 : index
    %659 = vector.load %arg5[%c82, %c0_114] : memref<100x128xf32, #tpu.memory_space<vmem>>, vector<1x128xf32>
    %660 = vector.shape_cast %659 : vector<1x128xf32> to vector<128xf32>
    %661 = vector.shape_cast %660 : vector<128xf32> to vector<1x128xf32>
    %662 = vector.broadcast %661 : vector<1x128xf32> to vector<8x128xf32>
    %663 = arith.mulf %662, %28 : vector<8x128xf32>
    %664 = arith.addf %658, %663 : vector<8x128xf32>
    %c83 = arith.constant 83 : index
    %c0_115 = arith.constant 0 : index
    %665 = vector.load %arg5[%c83, %c0_115] : memref<100x128xf32, #tpu.memory_space<vmem>>, vector<1x128xf32>
    %666 = vector.shape_cast %665 : vector<1x128xf32> to vector<128xf32>
    %667 = vector.shape_cast %666 : vector<128xf32> to vector<1x128xf32>
    %668 = vector.broadcast %667 : vector<1x128xf32> to vector<8x128xf32>
    %669 = arith.mulf %668, %35 : vector<8x128xf32>
    %670 = arith.addf %664, %669 : vector<8x128xf32>
    %c84 = arith.constant 84 : index
    %c0_116 = arith.constant 0 : index
    %671 = vector.load %arg5[%c84, %c0_116] : memref<100x128xf32, #tpu.memory_space<vmem>>, vector<1x128xf32>
    %672 = vector.shape_cast %671 : vector<1x128xf32> to vector<128xf32>
    %673 = vector.shape_cast %672 : vector<128xf32> to vector<1x128xf32>
    %674 = vector.broadcast %673 : vector<1x128xf32> to vector<8x128xf32>
    %675 = arith.mulf %674, %42 : vector<8x128xf32>
    %676 = arith.addf %670, %675 : vector<8x128xf32>
    %c85 = arith.constant 85 : index
    %c0_117 = arith.constant 0 : index
    %677 = vector.load %arg5[%c85, %c0_117] : memref<100x128xf32, #tpu.memory_space<vmem>>, vector<1x128xf32>
    %678 = vector.shape_cast %677 : vector<1x128xf32> to vector<128xf32>
    %679 = vector.shape_cast %678 : vector<128xf32> to vector<1x128xf32>
    %680 = vector.broadcast %679 : vector<1x128xf32> to vector<8x128xf32>
    %681 = arith.mulf %680, %49 : vector<8x128xf32>
    %682 = arith.addf %676, %681 : vector<8x128xf32>
    %c86 = arith.constant 86 : index
    %c0_118 = arith.constant 0 : index
    %683 = vector.load %arg5[%c86, %c0_118] : memref<100x128xf32, #tpu.memory_space<vmem>>, vector<1x128xf32>
    %684 = vector.shape_cast %683 : vector<1x128xf32> to vector<128xf32>
    %685 = vector.shape_cast %684 : vector<128xf32> to vector<1x128xf32>
    %686 = vector.broadcast %685 : vector<1x128xf32> to vector<8x128xf32>
    %687 = arith.mulf %686, %56 : vector<8x128xf32>
    %688 = arith.addf %682, %687 : vector<8x128xf32>
    %c87 = arith.constant 87 : index
    %c0_119 = arith.constant 0 : index
    %689 = vector.load %arg5[%c87, %c0_119] : memref<100x128xf32, #tpu.memory_space<vmem>>, vector<1x128xf32>
    %690 = vector.shape_cast %689 : vector<1x128xf32> to vector<128xf32>
    %691 = vector.shape_cast %690 : vector<128xf32> to vector<1x128xf32>
    %692 = vector.broadcast %691 : vector<1x128xf32> to vector<8x128xf32>
    %693 = arith.mulf %692, %63 : vector<8x128xf32>
    %694 = arith.addf %688, %693 : vector<8x128xf32>
    %c88 = arith.constant 88 : index
    %c0_120 = arith.constant 0 : index
    %695 = vector.load %arg5[%c88, %c0_120] : memref<100x128xf32, #tpu.memory_space<vmem>>, vector<1x128xf32>
    %696 = vector.shape_cast %695 : vector<1x128xf32> to vector<128xf32>
    %697 = vector.shape_cast %696 : vector<128xf32> to vector<1x128xf32>
    %698 = vector.broadcast %697 : vector<1x128xf32> to vector<8x128xf32>
    %699 = arith.mulf %698, %70 : vector<8x128xf32>
    %700 = arith.addf %694, %699 : vector<8x128xf32>
    %c89 = arith.constant 89 : index
    %c0_121 = arith.constant 0 : index
    %701 = vector.load %arg5[%c89, %c0_121] : memref<100x128xf32, #tpu.memory_space<vmem>>, vector<1x128xf32>
    %702 = vector.shape_cast %701 : vector<1x128xf32> to vector<128xf32>
    %703 = vector.shape_cast %702 : vector<128xf32> to vector<1x128xf32>
    %704 = vector.broadcast %703 : vector<1x128xf32> to vector<8x128xf32>
    %705 = arith.mulf %704, %77 : vector<8x128xf32>
    %706 = arith.addf %700, %705 : vector<8x128xf32>
    %707 = arith.mulf %645, %706 : vector<8x128xf32>
    %708 = arith.addf %638, %707 : vector<8x128xf32>
    %c9_122 = arith.constant 9 : index
    %709 = memref.load %arg2[%c9_122] : memref<10xf32, #tpu.memory_space<smem>>
    %710 = vector.broadcast %709 : f32 to vector<8x128xf32>
    %711 = arith.subf %7, %710 : vector<8x128xf32>
    %712 = arith.mulf %711, %711 : vector<8x128xf32>
    %713 = vector.broadcast %cst : f32 to vector<8x128xf32>
    %714 = arith.mulf %713, %712 : vector<8x128xf32>
    %715 = math.exp %714 : vector<8x128xf32>
    %cst_123 = arith.constant 0.000000e+00 : f32
    %716 = vector.broadcast %cst_123 : f32 to vector<8x128xf32>
    %c90 = arith.constant 90 : index
    %c0_124 = arith.constant 0 : index
    %717 = vector.load %arg5[%c90, %c0_124] : memref<100x128xf32, #tpu.memory_space<vmem>>, vector<1x128xf32>
    %718 = vector.shape_cast %717 : vector<1x128xf32> to vector<128xf32>
    %719 = vector.shape_cast %718 : vector<128xf32> to vector<1x128xf32>
    %720 = vector.broadcast %719 : vector<1x128xf32> to vector<8x128xf32>
    %721 = arith.mulf %720, %14 : vector<8x128xf32>
    %722 = arith.addf %716, %721 : vector<8x128xf32>
    %c91 = arith.constant 91 : index
    %c0_125 = arith.constant 0 : index
    %723 = vector.load %arg5[%c91, %c0_125] : memref<100x128xf32, #tpu.memory_space<vmem>>, vector<1x128xf32>
    %724 = vector.shape_cast %723 : vector<1x128xf32> to vector<128xf32>
    %725 = vector.shape_cast %724 : vector<128xf32> to vector<1x128xf32>
    %726 = vector.broadcast %725 : vector<1x128xf32> to vector<8x128xf32>
    %727 = arith.mulf %726, %21 : vector<8x128xf32>
    %728 = arith.addf %722, %727 : vector<8x128xf32>
    %c92 = arith.constant 92 : index
    %c0_126 = arith.constant 0 : index
    %729 = vector.load %arg5[%c92, %c0_126] : memref<100x128xf32, #tpu.memory_space<vmem>>, vector<1x128xf32>
    %730 = vector.shape_cast %729 : vector<1x128xf32> to vector<128xf32>
    %731 = vector.shape_cast %730 : vector<128xf32> to vector<1x128xf32>
    %732 = vector.broadcast %731 : vector<1x128xf32> to vector<8x128xf32>
    %733 = arith.mulf %732, %28 : vector<8x128xf32>
    %734 = arith.addf %728, %733 : vector<8x128xf32>
    %c93 = arith.constant 93 : index
    %c0_127 = arith.constant 0 : index
    %735 = vector.load %arg5[%c93, %c0_127] : memref<100x128xf32, #tpu.memory_space<vmem>>, vector<1x128xf32>
    %736 = vector.shape_cast %735 : vector<1x128xf32> to vector<128xf32>
    %737 = vector.shape_cast %736 : vector<128xf32> to vector<1x128xf32>
    %738 = vector.broadcast %737 : vector<1x128xf32> to vector<8x128xf32>
    %739 = arith.mulf %738, %35 : vector<8x128xf32>
    %740 = arith.addf %734, %739 : vector<8x128xf32>
    %c94 = arith.constant 94 : index
    %c0_128 = arith.constant 0 : index
    %741 = vector.load %arg5[%c94, %c0_128] : memref<100x128xf32, #tpu.memory_space<vmem>>, vector<1x128xf32>
    %742 = vector.shape_cast %741 : vector<1x128xf32> to vector<128xf32>
    %743 = vector.shape_cast %742 : vector<128xf32> to vector<1x128xf32>
    %744 = vector.broadcast %743 : vector<1x128xf32> to vector<8x128xf32>
    %745 = arith.mulf %744, %42 : vector<8x128xf32>
    %746 = arith.addf %740, %745 : vector<8x128xf32>
    %c95 = arith.constant 95 : index
    %c0_129 = arith.constant 0 : index
    %747 = vector.load %arg5[%c95, %c0_129] : memref<100x128xf32, #tpu.memory_space<vmem>>, vector<1x128xf32>
    %748 = vector.shape_cast %747 : vector<1x128xf32> to vector<128xf32>
    %749 = vector.shape_cast %748 : vector<128xf32> to vector<1x128xf32>
    %750 = vector.broadcast %749 : vector<1x128xf32> to vector<8x128xf32>
    %751 = arith.mulf %750, %49 : vector<8x128xf32>
    %752 = arith.addf %746, %751 : vector<8x128xf32>
    %c96 = arith.constant 96 : index
    %c0_130 = arith.constant 0 : index
    %753 = vector.load %arg5[%c96, %c0_130] : memref<100x128xf32, #tpu.memory_space<vmem>>, vector<1x128xf32>
    %754 = vector.shape_cast %753 : vector<1x128xf32> to vector<128xf32>
    %755 = vector.shape_cast %754 : vector<128xf32> to vector<1x128xf32>
    %756 = vector.broadcast %755 : vector<1x128xf32> to vector<8x128xf32>
    %757 = arith.mulf %756, %56 : vector<8x128xf32>
    %758 = arith.addf %752, %757 : vector<8x128xf32>
    %c97 = arith.constant 97 : index
    %c0_131 = arith.constant 0 : index
    %759 = vector.load %arg5[%c97, %c0_131] : memref<100x128xf32, #tpu.memory_space<vmem>>, vector<1x128xf32>
    %760 = vector.shape_cast %759 : vector<1x128xf32> to vector<128xf32>
    %761 = vector.shape_cast %760 : vector<128xf32> to vector<1x128xf32>
    %762 = vector.broadcast %761 : vector<1x128xf32> to vector<8x128xf32>
    %763 = arith.mulf %762, %63 : vector<8x128xf32>
    %764 = arith.addf %758, %763 : vector<8x128xf32>
    %c98 = arith.constant 98 : index
    %c0_132 = arith.constant 0 : index
    %765 = vector.load %arg5[%c98, %c0_132] : memref<100x128xf32, #tpu.memory_space<vmem>>, vector<1x128xf32>
    %766 = vector.shape_cast %765 : vector<1x128xf32> to vector<128xf32>
    %767 = vector.shape_cast %766 : vector<128xf32> to vector<1x128xf32>
    %768 = vector.broadcast %767 : vector<1x128xf32> to vector<8x128xf32>
    %769 = arith.mulf %768, %70 : vector<8x128xf32>
    %770 = arith.addf %764, %769 : vector<8x128xf32>
    %c99 = arith.constant 99 : index
    %c0_133 = arith.constant 0 : index
    %771 = vector.load %arg5[%c99, %c0_133] : memref<100x128xf32, #tpu.memory_space<vmem>>, vector<1x128xf32>
    %772 = vector.shape_cast %771 : vector<1x128xf32> to vector<128xf32>
    %773 = vector.shape_cast %772 : vector<128xf32> to vector<1x128xf32>
    %774 = vector.broadcast %773 : vector<1x128xf32> to vector<8x128xf32>
    %775 = arith.mulf %774, %77 : vector<8x128xf32>
    %776 = arith.addf %770, %775 : vector<8x128xf32>
    %777 = arith.mulf %715, %776 : vector<8x128xf32>
    %778 = arith.addf %708, %777 : vector<8x128xf32>
    %779 = arith.index_cast %3 : i32 to index
    %c0_134 = arith.constant 0 : index
    %780 = vector.load %arg6[%779, %c0_134] : memref<8x128xf32, #tpu.memory_space<vmem>>, vector<8x128xf32>
    tpu.vector_store %arg6[%779, %c0_134], %778 {strides = array<i32>} : memref<8x128xf32, #tpu.memory_space<vmem>>, vector<8x128xf32>,
    %c1_i32_135 = arith.constant 1 : i32
    return
  }
  func.func @transform_0(%arg0: i32, %arg1: i32) -> i32 {
    %c0_i32 = arith.constant 0 : i32
    %c0_i32_0 = arith.constant 0 : i32
    return %c0_i32 : i32
  }
  func.func @transform_1(%arg0: i32, %arg1: i32) -> (i32, i32) {
    %c0_i32 = arith.constant 0 : i32
    return %arg1, %arg0 : i32, i32
  }
  func.func @transform_2(%arg0: i32, %arg1: i32) -> (i32, i32) {
    %c1_i32 = arith.constant 1 : i32
    %0 = arith.addi %arg0, %c1_i32 : i32
    %c0_i32 = arith.constant 0 : i32
    return %arg1, %0 : i32, i32
  }
  func.func @transform_3(%arg0: i32, %arg1: i32) -> (i32, i32) {
    %c0_i32 = arith.constant 0 : i32
    %c0_i32_0 = arith.constant 0 : i32
    return %c0_i32, %arg0 : i32, i32
  }
  func.func @transform_4(%arg0: i32, %arg1: i32) -> (i32, i32) {
    %c0_i32 = arith.constant 0 : i32
    return %arg1, %arg0 : i32, i32
  }
}

</mosaic_0001>

<bundles_post_ra>
// kernel: tpu_custom_call.1
= control target key start
LH: loop header
LB: loop body
LE: loop exit
PB: predicated region body
PF: predicated region fallthrough
CT: control target
= control target key end

     0   :  { %9 = vsyncpa [#allocation5], 0  ;;  %s1480_s0 = inlined_call_operand.hbm [shape: f32[10], index: 0, kind: input, shape index: {}]   ;;  %s1481_s1 = inlined_call_operand.hbm [shape: f32[8,256], index: 1, kind: input, shape index: {}]   ;;  %s1482_s2 = inlined_call_operand.hbm [shape: f32[8,256], index: 2, kind: input, shape index: {}]   ;;  %s1483_s3 = inlined_call_operand.hbm [shape: f32[100,128], index: 3, kind: input, shape index: {}]   ;;  %s1484_s4 = inlined_call_operand.hbm [shape: f32[8,128], index: 4, kind: output, shape index: {}]  }
   0x1   :  { %10 = vsyncpa [#allocation3], 0 }
   0x2   :  { %11 = vsyncpa [#allocation8], 0  ;;  %s930_s17 = scalar_lea.hbm %s1482_s2, 128 }
   0x3   :  { %12 = vsyncpa [#allocation4], 0  ;;  %s1196_s18 = smov [#allocation7]   ;;  %s1111_s22 = scalar_lea.hbm %s1482_s2, 256 }
   0x4   :  { %s40_s19 = sshll.u32 %s1196_s18, 4  ;;  %p1088_p0 = scmp.ne.s32.totalorder %s930_s17, %s1111_s22  ;;  %s41_s19 = int_to_ptr.vmem [resolvable:$true] %s40_s19 }
   0x5   :  { %p1090_p1 = scmp.lt.u32.totalorder %s930_s17, %s1482_s2  ;;  %p1091_p2 = scmp.lt.u32.totalorder %s1111_s22, %s1111_s22 }
   0x6   :  { %p1093_p4 = scmp.lt.u32.totalorder %s1111_s22, %s930_s17 }
   0x7   :  { %p1092_p3 = por %p1091_p2, %p1090_p1 }
   0x9   :  { %p1094_p5 = por %p1093_p4, %p1092_p3 }
   0xb   :  { %p1095_p6 = pnand %p1094_p5, %p1088_p0 }
   0xd   :  { %1098 = shalt.err (!%p1095_p6)
}
   0xe   :  { %s1099_s25 = scalar_lea.vmem %s41_s19, 128  ;;  %p1104_p8 = scmp.lt.s32.totalorder %s41_s19, %s41_s19 }
   0xf   :  { %p1100_p7 = scmp.ne.s32.totalorder %s41_s19, %s1099_s25  ;;  %p1105_p9 = scmp.lt.s32.totalorder %s1099_s25, %s1099_s25 }
  0x11   :  { %p1106_p10 = por %p1105_p9, %p1104_p8 }
  0x13   :  { %p1107_p11 = pnand %p1106_p10, %p1100_p7 }
  0x15   :  { %1110 = shalt.err (!%p1107_p11)
}
  0x16   :  { %43 = dma.hbm_to_vmem [thread:$0]  %s930_s17, 128, %s41_s19, [#allocation8]  }
  0x17   :  { %s1112_s28 = scalar_lea.hbm %s1480_s0, 16 }
  0x18   :  { %p1113_p12 = scmp.ne.s32.totalorder %s1480_s0, %s1112_s28  ;;  %p1116_p13 = scmp.lt.u32.totalorder %s1112_s28, %s1480_s0 }
  0x1a   :  { %p1118_p0 = pnand %p1116_p13, %p1113_p12 }
  0x1c   :  { %1121 = shalt.err (!%p1118_p0)
}
  0x1d   :  { %s1197_s6 = smov [#allocation2]   ;;  %s1198_s9 = smov [#allocation6]  }
  0x1e   :  { %20 = dma.hbm_to_smem %s1480_s0, 16, %s1197_s6, [#allocation5]  }
  0x1f   :  { %s27_s10 = sshll.u32 %s1198_s9, 4  ;;  %s1199_s11 = smov [#allocation9]   ;;  %s28_s10 = int_to_ptr.vmem [resolvable:$true] %s27_s10 }
  0x20   :  { %s49_s12 = sshll.u32 %s1199_s11, 4  ;;  %s1122_s15 = scalar_lea.hbm %s1481_s1, 128  ;;  %s50_s12 = int_to_ptr.vmem [resolvable:$true] %s49_s12 }
  0x21   :  { %p1123_p1 = scmp.ne.s32.totalorder %s1481_s1, %s1122_s15  ;;  %s1124_s20 = scalar_lea.hbm %s1481_s1, 256 }
  0x22   :  { %p1125_p2 = scmp.lt.u32.totalorder %s1124_s20, %s1122_s15  ;;  %p1126_p3 = scmp.lt.u32.totalorder %s1122_s15, %s1481_s1 }
  0x24   :  { %p1127_p4 = por %p1126_p3, %p1125_p2 }
  0x26   :  { %p1128_p5 = pnand %p1127_p4, %p1123_p1 }
  0x28   :  { %1131 = shalt.err (!%p1128_p5)
}
  0x29   :  { %s1132_s22 = scalar_lea.vmem %s28_s10, 128  ;;  %p1137_p7 = scmp.lt.s32.totalorder %s28_s10, %s28_s10 }
  0x2a   :  { %p1133_p6 = scmp.ne.s32.totalorder %s28_s10, %s1132_s22  ;;  %p1138_p8 = scmp.lt.s32.totalorder %s1132_s22, %s1132_s22 }
  0x2c   :  { %p1139_p9 = por %p1138_p8, %p1137_p7 }
  0x2e   :  { %p1140_p10 = pnand %p1139_p9, %p1133_p6 }
  0x30   :  { %1143 = shalt.err (!%p1140_p10)
}
  0x31   :  { %30 = dma.hbm_to_vmem [thread:$0]  %s1481_s1, 128, %s28_s10, [#allocation3]  }
  0x32   :  { %s1144_s27 = scalar_lea.hbm %s1483_s3, 1664 }
  0x33   :  { %p1145_p11 = scmp.ne.s32.totalorder %s1483_s3, %s1144_s27  ;;  %p1148_p12 = scmp.lt.u32.totalorder %s1144_s27, %s1483_s3 }
  0x35   :  { %p1150_p13 = pnand %p1148_p12, %p1145_p11 }
  0x37   :  { %1153 = shalt.err (!%p1150_p13)
}
  0x38   :  { %s1154_s5 = scalar_lea.vmem %s50_s12, 1664  ;;  %p1159_p1 = scmp.lt.s32.totalorder %s50_s12, %s50_s12 }
  0x39   :  { %p1155_p0 = scmp.ne.s32.totalorder %s50_s12, %s1154_s5  ;;  %p1160_p2 = scmp.lt.s32.totalorder %s1154_s5, %s1154_s5 }
  0x3b   :  { %p1161_p3 = por %p1160_p2, %p1159_p1 }
  0x3d   :  { %p1162_p4 = pnand %p1161_p3, %p1155_p0 }
  0x3f   :  { %1165 = shalt.err (!%p1162_p4)
}
  0x40   :  { %s1200_s1 = smov 128   ;;  %s1201_s6 = smov 8  }
  0x41   :  { %55 = dma.hbm_to_vmem [thread:$0]  %s1483_s3, 1664, %s50_s12, [#allocation8], %s1200_s1, %s1200_s1, %s1201_s6  }
  0x42   :  { %1188 = dma.done.wait [#allocation5], 16  }
  0x43   :  { %1189 = vsyncadd [#allocation5], 4294967280 }
  0x44   :  { %1190 = dma.done.wait [#allocation3], 128  }
  0x45   :  { %1191 = vsyncadd [#allocation3], 4294967168 }
  0x46   :  { %1192 = dma.done.wait [#allocation8], 1792  }
  0x47   :  { %1193 = vsyncadd [#allocation8], 4294965504 }
  0x48   :  { %68 = sfence }
  0x49   :  { %s1276_s9 = sld [smem:[#allocation2]]  ;;  %s1278_s10 = sld [smem:[#allocation2 + $0x1]]  ;;  %v70_v0 = vld [vmem:[#allocation6] sm:$0xff]  ;;  %v1313_v35 = vld [vmem:[#allocation7] sm:$0xff]  ;;  %v940_v58 = vld [vmem:[#allocation9] ss:$0 sm:$0xff] }
  0x4a   :  { %s1280_s11 = sld [smem:[#allocation2 + $0x2]]  ;;  %s1282_s13 = sld [smem:[#allocation2 + $0x3]]  ;;  %v941_v59 = vld [vmem:[#allocation9 + $0x1] ss:$0 sm:$0xff]  ;;  %v950_v63 = vld [vmem:[#allocation9 + $0xa] ss:$0 sm:$0xff] }
  0x4b   :  { %s1284_s3 = sld [smem:[#allocation2 + $0x4]]  ;;  %s1286_s12 = sld [smem:[#allocation2 + $0x5]] }
  0x4c   :  { %s1288_s14 = sld [smem:[#allocation2 + $0x6]]  ;;  %s1290_s15 = sld [smem:[#allocation2 + $0x7]] }
  0x4d   :  { %s1292_s16 = sld [smem:[#allocation2 + $0x8]]  ;;  %s1300_s17 = sld [smem:[#allocation2 + $0x9]] }
  0x4e   :  { %s1202_s18 = smov [#allocation10]  }
  0x4f   :  { %v73_v1 = vstv %s1276_s9  ;;  %v80_v2 = vstv %s1278_s10  ;;  %s919_s19 = sshll.u32 %s1202_s18, 4  ;;  %s920_s19 = int_to_ptr.vmem [resolvable:$true] %s919_s19 }
  0x50   :  { %v74_v3 = vsub.f32 %v70_v0, %v73_v1  ;;  %v81_v4 = vsub.f32 %v70_v0, %v80_v2  ;;  %v87_v5 = vstv %s1280_s11  ;;  %v94_v6 = vstv %s1282_s13  ;;  %s1166_s20 = scalar_lea.vmem %s920_s19, 128  ;;  %p1171_p6 = scmp.lt.s32.totalorder %s920_s19, %s920_s19 }
  0x51   :  { %v88_v7 = vsub.f32 %v70_v0, %v87_v5  ;;  %v95_v8 = vsub.f32 %v70_v0, %v94_v6  ;;  %v101_v9 = vstv %s1284_s3  ;;  %v108_v10 = vstv %s1286_s12  ;;  %p1167_p5 = scmp.ne.s32.totalorder %s920_s19, %s1166_s20  ;;  %p1172_p7 = scmp.lt.s32.totalorder %s1166_s20, %s1166_s20 }
  0x52   :  { %v75_v11 = vmul.f32 %v74_v3, %v74_v3  ;;  %v82_v12 = vmul.f32 %v81_v4, %v81_v4  ;;  %v102_v13 = vsub.f32 %v70_v0, %v101_v9  ;;  %v109_v14 = vsub.f32 %v70_v0, %v108_v10 }
  0x53   :  { %v89_v15 = vmul.f32 %v88_v7, %v88_v7  ;;  %v96_v16 = vmul.f32 %v95_v8, %v95_v8  ;;  %v115_v17 = vstv %s1288_s14  ;;  %v122_v18 = vstv %s1290_s15  ;;  %v952_v7 = vld [vmem:[#allocation9 + $0xc] ss:$0 sm:$0xff]  ;;  %v961_v8 = vld [vmem:[#allocation9 + $0x15] ss:$0 sm:$0xff]  ;;  %p1173_p8 = por %p1172_p7, %p1171_p6 }
  0x54   :  { %v76_v19 = vmul.f32 -0.5624999, %v75_v11  ;;  %v83_v20 = vmul.f32 -0.5624999, %v82_v12  ;;  %v103_v21 = vmul.f32 %v102_v13, %v102_v13  ;;  %v110_v22 = vmul.f32 %v109_v14, %v109_v14  ;;  %v943_v13 = vld [vmem:[#allocation9 + $0x3] ss:$0 sm:$0xff] }
  0x55   :  { %v90_v23 = vmul.f32 -0.5624999, %v89_v15  ;;  %v97_v24 = vmul.f32 -0.5624999, %v96_v16  ;;  %v116_v25 = vsub.f32 %v70_v0, %v115_v17  ;;  %v123_v26 = vsub.f32 %v70_v0, %v122_v18  ;;  %v953_v15 = vld [vmem:[#allocation9 + $0xd] ss:$0 sm:$0xff]  ;;  %p1174_p9 = pnand %p1173_p8, %p1167_p5 }
  0x56   :  { %v77_v27 = vmul.f32 1.442695, %v76_v19  ;;  %v84_v28 = vmul.f32 1.442695, %v83_v20  ;;  %v104_v29 = vmul.f32 -0.5624999, %v103_v21  ;;  %v129_v30 = vstv %s1292_s16 }
  0x57   :  { %v91_v31 = vmul.f32 1.442695, %v90_v23  ;;  %v98_v32 = vmul.f32 1.442695, %v97_v24  ;;  %v111_v33 = vmul.f32 -0.5624999, %v110_v22  ;;  %v117_v34 = vmul.f32 %v116_v25, %v116_v25 }
  0x58   :  { %1047 = vpow2.f32 %v77_v27  ;;  %v105_v36 = vmul.f32 1.442695, %v104_v29  ;;  %v124_v37 = vmul.f32 %v123_v26, %v123_v26  ;;  %v130_v38 = vsub.f32 %v70_v0, %v129_v30  ;;  %v944_v26 = vld [vmem:[#allocation9 + $0x4] ss:$0 sm:$0xff] }
  0x59   :  { %1049 = vpow2.f32 %v84_v28  ;;  %v112_v39 = vmul.f32 1.442695, %v111_v33  ;;  %v118_v40 = vmul.f32 -0.5624999, %v117_v34  ;;  %v136_v41 = vstv %s1300_s17  ;;  %v954_v28 = vld [vmem:[#allocation9 + $0xe] ss:$0 sm:$0xff] }
  0x5a   :  { %1051 = vpow2.f32 %v91_v31  ;;  %v125_v42 = vmul.f32 -0.5624999, %v124_v37  ;;  %v131_v43 = vmul.f32 %v130_v38, %v130_v38  ;;  %v137_v44 = vsub.f32 %v70_v0, %v136_v41  ;;  %v942_v0 = vld [vmem:[#allocation9 + $0x2] ss:$0 sm:$0xff]  ;;  %v963_v38 = vld [vmem:[#allocation9 + $0x17] ss:$0 sm:$0xff] }
  0x5b   :  { %1053 = vpow2.f32 %v98_v32  ;;  %v119_v45 = vmul.f32 1.442695, %v118_v40  ;;  %v142_v46 = vsub.f32 %v1313_v35, %v73_v1  ;;  %v219_v47 = vsub.f32 %v1313_v35, %v80_v2  ;;  %v951_v1 = vld [vmem:[#allocation9 + $0xb] ss:$0 sm:$0xff]  ;;  %v960_v2 = vld [vmem:[#allocation9 + $0x14] ss:$0 sm:$0xff] }
  0x5c   :  { %1055 = vpow2.f32 %v105_v36  ;;  %v126_v48 = vmul.f32 1.442695, %v125_v42  ;;  %v132_v49 = vmul.f32 -0.5624999, %v131_v43  ;;  %v138_v50 = vmul.f32 %v137_v44, %v137_v44  ;;  %v945_v40 = vld [vmem:[#allocation9 + $0x5] ss:$0 sm:$0xff] }
  0x5d   :  { %1057 = vpow2.f32 %v112_v39  ;;  %v143_v51 = vmul.f32 %v142_v46, %v142_v46  ;;  %v220_v52 = vmul.f32 %v219_v47, %v219_v47  ;;  %v296_v53 = vsub.f32 %v1313_v35, %v87_v5  ;;  %v955_v42 = vld [vmem:[#allocation9 + $0xf] ss:$0 sm:$0xff] }
  0x5e   :  { %1059 = vpow2.f32 %v119_v45  ;;  %v133_v54 = vmul.f32 1.442695, %v132_v49  ;;  %v139_v55 = vmul.f32 -0.5624999, %v138_v50  ;;  %v373_v56 = vsub.f32 %v1313_v35, %v94_v6  ;;  %v946_v49 = vld [vmem:[#allocation9 + $0x6] ss:$0 sm:$0xff] }
  0x5f   :  { %v144_v57 = vmul.f32 -0.5624999, %v143_v51  ;;  %v297_v60 = vmul.f32 %v296_v53, %v296_v53  ;;  %1061 = vpow2.f32 %v126_v48  ;;  %v221_v62 = vmul.f32 -0.5624999, %v220_v52  ;;  %v964_v52 = vld [vmem:[#allocation9 + $0x18] ss:$0 sm:$0xff] }
  0x60   :  { %v140_v61 = vmul.f32 1.442695, %v139_v55  ;;  %1063 = vpow2.f32 %v133_v54  ;;  %v374_v3 = vmul.f32 %v373_v56, %v373_v56  ;;  %v450_v6 = vsub.f32 %v1313_v35, %v101_v9  ;;  %v962_v9 = vld [vmem:[#allocation9 + $0x16] ss:$0 sm:$0xff]  ;;  %v956_v53 = vld [vmem:[#allocation9 + $0x10] ss:$0 sm:$0xff] }
  0x61   :  { %v145_v5 = vmul.f32 1.442695, %v144_v57  ;;  %v298_v16 = vmul.f32 -0.5624999, %v297_v60  ;;  %v222_v21 = vmul.f32 1.442695, %v221_v62 }
  0x62   :  { %v1324_v4 = vpop.eup %1047  ;;  %1065 = vpow2.f32 %v140_v61  ;;  %v1343_v31 = vmul.f32 -0.5624999, %v374_v3  ;;  %v965_v56 = vld [vmem:[#allocation9 + $0x19] ss:$0 sm:$0xff]  ;;  %v1357_v57 = vmul.f32 %v450_v6, %v450_v6  ;;  %v947_v61 = vld [vmem:[#allocation9 + $0x7] ss:$0 sm:$0xff] }
  0x63   :  { %v1329_v11 = vpop.eup %1049  ;;  %v152_v12 = vmul.f32 %v1324_v4, %v940_v58  ;;  %v229_v14 = vmul.f32 %v1324_v4, %v950_v63  ;;  %v306_v23 = vmul.f32 %v1324_v4, %v960_v2  ;;  %1067 = vpow2.f32 %v145_v5  ;;  %v948_v5 = vld [vmem:[#allocation9 + $0x8] ss:$0 sm:$0xff] }
  0x64   :  { %v1333_v19 = vpop.eup %1051  ;;  %v159_v20 = vmul.f32 %v1329_v11, %v941_v59  ;;  %v236_v22 = vmul.f32 %v1329_v11, %v951_v1  ;;  %v313_v29 = vmul.f32 %v1329_v11, %v961_v8  ;;  %v299_v43 = vmul.f32 1.442695, %v298_v16  ;;  %v966_v1 = vld [vmem:[#allocation9 + $0x1a] ss:$0 sm:$0xff]  ;;  %v967_v16 = vld [vmem:[#allocation9 + $0x1b] ss:$0 sm:$0xff] }
  0x65   :  { %v1338_v24 = vpop.eup %1053  ;;  %v166_v25 = vmul.f32 %v1333_v19, %v942_v0  ;;  %v243_v27 = vmul.f32 %v1333_v19, %v952_v7  ;;  %v320_v45 = vmul.f32 %v1333_v19, %v962_v9  ;;  %1069 = vpow2.f32 %v222_v21  ;;  %v957_v0 = vld [vmem:[#allocation9 + $0x11] ss:$0 sm:$0xff]  ;;  %v958_v7 = vld [vmem:[#allocation9 + $0x12] ss:$0 sm:$0xff]  ;;  %v971_v21 = vld [vmem:[#allocation9 + $0x1f] ss:$0 sm:$0xff] }
  0x66   :  { %v1345_v32 = vpop.eup %1055  ;;  %v160_v33 = vadd.f32 %v159_v20, %v152_v12  ;;  %v173_v34 = vmul.f32 %v1338_v24, %v943_v13  ;;  %v237_v36 = vadd.f32 %v236_v22, %v229_v14  ;;  %v250_v37 = vmul.f32 %v1338_v24, %v953_v15  ;;  %v970_v20 = vld [vmem:[#allocation9 + $0x1e] ss:$0 sm:$0xff]  ;;  %v949_v9 = vld [vmem:[#allocation9 + $0x9] ss:$0 sm:$0xff] }
  0x67   :  { %v1349_v39 = vpop.eup %1057  ;;  %v314_v44 = vadd.f32 %v313_v29, %v306_v23  ;;  %v180_v48 = vmul.f32 %v1345_v32, %v944_v26  ;;  %v257_v51 = vmul.f32 %v1345_v32, %v954_v28  ;;  %v327_v55 = vmul.f32 %v1338_v24, %v963_v38  ;;  %v972_v28 = vld [vmem:[#allocation9 + $0x20] ss:$0 sm:$0xff]  ;;  %v973_v38 = vld [vmem:[#allocation9 + $0x21] ss:$0 sm:$0xff] }
  0x68   :  { %v1352_v46 = vpop.eup %1059  ;;  %v167_v47 = vadd.f32 %v166_v25, %v160_v33  ;;  %v244_v50 = vadd.f32 %v243_v27, %v237_v36  ;;  %v187_v60 = vmul.f32 %v1349_v39, %v945_v40  ;;  %v264_v63 = vmul.f32 %v1349_v39, %v955_v42  ;;  %v959_v40 = vld [vmem:[#allocation9 + $0x13] ss:$0 sm:$0xff] }
  0x69   :  { %v321_v54 = vadd.f32 %v320_v45, %v314_v44  ;;  %v1359_v58 = vpop.eup %1061  ;;  %v194_v3 = vmul.f32 %v1352_v46, %v946_v49  ;;  %1071 = vpow2.f32 %v299_v43  ;;  %v334_v6 = vmul.f32 %v1345_v32, %v964_v52  ;;  %v969_v44 = vld [vmem:[#allocation9 + $0x1d] ss:$0 sm:$0xff]  ;;  %v974_v52 = vld [vmem:[#allocation9 + $0x22] ss:$0 sm:$0xff] }
  0x6a   :  { %v174_v59 = vadd.f32 %v173_v34, %v167_v47  ;;  %v251_v62 = vadd.f32 %v250_v37, %v244_v50  ;;  %v1363_v2 = vpop.eup %1063  ;;  %v271_v14 = vmul.f32 %v1352_v46, %v956_v53  ;;  %v341_v15 = vmul.f32 %v1349_v39, %v965_v56  ;;  %v968_v37 = vld [vmem:[#allocation9 + $0x1c] ss:$0 sm:$0xff] }
  0x6b   :  { %v328_v8 = vadd.f32 %v327_v55, %v321_v54  ;;  %v201_v23 = vmul.f32 %v1359_v58, %v947_v61  ;;  %v278_v25 = vmul.f32 %v1359_v58, %v957_v0  ;;  %v348_v27 = vmul.f32 %v1352_v46, %v966_v1  ;;  %v980_v1 = vld [vmem:[#allocation9 + $0x28] ss:$0 sm:$0xff] }
  0x6c   :  { %v181_v12 = vadd.f32 %v180_v48, %v174_v59  ;;  %v258_v13 = vadd.f32 %v257_v51, %v251_v62  ;;  %v1369_v22 = vpop.eup %1065  ;;  %v208_v33 = vmul.f32 %v1363_v2, %v948_v5  ;;  %v285_v36 = vmul.f32 %v1363_v2, %v958_v7 }
  0x6d   :  { %v335_v26 = vadd.f32 %v334_v6, %v328_v8  ;;  %v355_v43 = vmul.f32 %v1359_v58, %v967_v16  ;;  %v383_v45 = vmul.f32 %v1324_v4, %v970_v20  ;;  %v390_v47 = vmul.f32 %v1329_v11, %v971_v21  ;;  %v1068_v53 = vpop.eup %1067  ;;  %v976_v20 = vld [vmem:[#allocation9 + $0x24] ss:$0 sm:$0xff] }
  0x6e   :  { %v188_v29 = vadd.f32 %v187_v60, %v181_v12  ;;  %v265_v34 = vadd.f32 %v264_v63, %v258_v13  ;;  %v215_v49 = vmul.f32 %v1369_v22, %v949_v9  ;;  %v397_v51 = vmul.f32 %v1333_v19, %v972_v28  ;;  %v975_v60 = vld [vmem:[#allocation9 + $0x23] ss:$0 sm:$0xff]  ;;  %v982_v13 = vld [vmem:[#allocation9 + $0x2a] ss:$0 sm:$0xff] }
  0x6f   :  { %v342_v42 = vadd.f32 %v341_v15, %v335_v26  ;;  %v362_v55 = vmul.f32 %v1363_v2, %v968_v37  ;;  %v391_v56 = vadd.f32 %v390_v47, %v383_v45  ;;  %v404_v59 = vmul.f32 %v1338_v24, %v973_v38  ;;  %v1070_v5 = vpop.eup %1069 }
  0x70   :  { %v195_v48 = vadd.f32 %v194_v3, %v188_v29  ;;  %v272_v50 = vadd.f32 %v271_v14, %v265_v34  ;;  %v292_v63 = vmul.f32 %v1369_v22, %v959_v40  ;;  %v369_v0 = vmul.f32 %v1369_v22, %v969_v44  ;;  %v981_v3 = vld [vmem:[#allocation9 + $0x29] ss:$0 sm:$0xff]  ;;  %v978_v40 = vld [vmem:[#allocation9 + $0x26] ss:$0 sm:$0xff] }
  0x71   :  { %v349_v54 = vadd.f32 %v348_v27, %v342_v42  ;;  %v376_v8 = vmul.f32 1.442695, %v1343_v31  ;;  %v398_v6 = vadd.f32 %v397_v51, %v391_v56  ;;  %v411_v12 = vmul.f32 %v1345_v32, %v974_v52  ;;  %v977_v27 = vld [vmem:[#allocation9 + $0x25] ss:$0 sm:$0xff]  ;;  %v979_v42 = vld [vmem:[#allocation9 + $0x27] ss:$0 sm:$0xff] }
  0x72   :  { %v202_v61 = vadd.f32 %v201_v23, %v195_v48  ;;  %v279_v62 = vadd.f32 %v278_v25, %v272_v50  ;;  %v418_v16 = vmul.f32 %v1349_v39, %v975_v60  ;;  %v452_v21 = vmul.f32 -0.5624999, %v1357_v57  ;;  %v983_v23 = vld [vmem:[#allocation9 + $0x2b] ss:$0 sm:$0xff]  ;;  %v985_v48 = vld [vmem:[#allocation9 + $0x2d] ss:$0 sm:$0xff] }
  0x73   :  { %v356_v7 = vadd.f32 %v355_v43, %v349_v54  ;;  %v1072_v9 = vpop.eup %1071  ;;  %v405_v26 = vadd.f32 %v404_v59, %v398_v6  ;;  %v460_v28 = vmul.f32 %v1324_v4, %v980_v1  ;;  %v467_v31 = vmul.f32 %v1329_v11, %v981_v3  ;;  %v990_v54 = vld [vmem:[#allocation9 + $0x32] ss:$0 sm:$0xff]  ;;  %v992_v56 = vld [vmem:[#allocation9 + $0x34] ss:$0 sm:$0xff]  ;;  %v988_v6 = vld [vmem:[#allocation9 + $0x30] ss:$0 sm:$0xff] }
  0x74   :  { %v209_v14 = vadd.f32 %v208_v33, %v202_v61  ;;  %v286_v15 = vadd.f32 %v285_v36, %v279_v62  ;;  %v474_v33 = vmul.f32 %v1333_v19, %v982_v13  ;;  %v984_v36 = vld [vmem:[#allocation9 + $0x2c] ss:$0 sm:$0xff]  ;;  %v527_v37 = vsub.f32 %v1313_v35, %v108_v10 }
  0x75   :  { %v363_v25 = vadd.f32 %v362_v55, %v356_v7  ;;  %v412_v38 = vadd.f32 %v411_v12, %v405_v26  ;;  %v425_v57 = vmul.f32 %v1352_v46, %v976_v20  ;;  %v468_v43 = vadd.f32 %v467_v31, %v460_v28  ;;  %v991_v55 = vld [vmem:[#allocation9 + $0x33] ss:$0 sm:$0xff]  ;;  %v989_v20 = vld [vmem:[#allocation9 + $0x31] ss:$0 sm:$0xff]  ;;  %v995_v28 = vld [vmem:[#allocation9 + $0x37] ss:$0 sm:$0xff] }
  0x76   :  { %v216_v29 = vadd.f32 %v215_v49, %v209_v14  ;;  %v293_v34 = vadd.f32 %v292_v63, %v286_v15  ;;  %v481_v44 = vmul.f32 %v1338_v24, %v983_v23  ;;  %1073 = vpow2.f32 %v376_v8  ;;  %v986_v63 = vld [vmem:[#allocation9 + $0x2e] ss:$0 sm:$0xff]  ;;  %v987_v8 = vld [vmem:[#allocation9 + $0x2f] ss:$0 sm:$0xff]  ;;  %v1000_v31 = vld [vmem:[#allocation9 + $0x3c] ss:$0 sm:$0xff] }
  0x77   :  { %v432_v45 = vmul.f32 %v1359_v58, %v977_v27  ;;  %v453_v47 = vmul.f32 1.442695, %v452_v21  ;;  %v604_v49 = vsub.f32 %v1313_v35, %v115_v17  ;;  %v370_v50 = vadd.f32 %v369_v0, %v363_v25  ;;  %v993_v0 = vld [vmem:[#allocation9 + $0x35] ss:$0 sm:$0xff]  ;;  %v994_v21 = vld [vmem:[#allocation9 + $0x36] ss:$0 sm:$0xff] }
  0x78   :  { %v419_v51 = vadd.f32 %v418_v16, %v412_v38  ;;  %v475_v52 = vadd.f32 %v474_v33, %v468_v43  ;;  %v488_v10 = vmul.f32 %v1345_v32, %v984_v36  ;;  %v217_v59 = vmul.f32 %v1068_v53, %v216_v29 }
  0x79   :  { %v294_v60 = vmul.f32 %v1070_v5, %v293_v34  ;;  %v439_v61 = vmul.f32 %v1363_v2, %v978_v40  ;;  %v446_v62 = vmul.f32 %v1369_v22, %v979_v42  ;;  %v495_v7 = vmul.f32 %v1349_v39, %v985_v48  ;;  %v996_v42 = vld [vmem:[#allocation9 + $0x38] ss:$0 sm:$0xff]  ;;  %v997_v48 = vld [vmem:[#allocation9 + $0x39] ss:$0 sm:$0xff] }
  0x7a   :  { %v426_v1 = vadd.f32 %v425_v57, %v419_v51  ;;  %v482_v3 = vadd.f32 %v481_v44, %v475_v52  ;;  %v528_v17 = vmul.f32 %v527_v37, %v527_v37  ;;  %1075 = vpow2.f32 %v453_v47  ;;  %v1002_v37 = vld [vmem:[#allocation9 + $0x3e] ss:$0 sm:$0xff]  ;;  %v1003_v51 = vld [vmem:[#allocation9 + $0x3f] ss:$0 sm:$0xff] }
  0x7b   :  { %v537_v12 = vmul.f32 %v1324_v4, %v990_v54  ;;  %v544_v13 = vmul.f32 %v1329_v11, %v991_v55  ;;  %v551_v53 = vmul.f32 %v1333_v19, %v992_v56  ;;  %v371_v5 = vmul.f32 %v1072_v9, %v370_v50  ;;  %v1001_v9 = vld [vmem:[#allocation9 + $0x3d] ss:$0 sm:$0xff]  ;;  %v998_v55 = vld [vmem:[#allocation9 + $0x3a] ss:$0 sm:$0xff]  ;;  %v999_v56 = vld [vmem:[#allocation9 + $0x3b] ss:$0 sm:$0xff] }
  0x7c   :  { %v433_v14 = vadd.f32 %v432_v45, %v426_v1  ;;  %v489_v15 = vadd.f32 %v488_v10, %v482_v3  ;;  %v502_v16 = vmul.f32 %v1352_v46, %v986_v63  ;;  %v295_v23 = vadd.f32 %v294_v60, %v217_v59  ;;  %v1004_v1 = vld [vmem:[#allocation9 + $0x40] ss:$0 sm:$0xff] }
  0x7d   :  { %v529_v25 = vmul.f32 -0.5624999, %v528_v17  ;;  %v545_v26 = vadd.f32 %v544_v13, %v537_v12  ;;  %v558_v27 = vmul.f32 %v1338_v24, %v993_v0  ;;  %v509_v33 = vmul.f32 %v1359_v58, %v987_v8  ;;  %v1005_v8 = vld [vmem:[#allocation9 + $0x41] ss:$0 sm:$0xff] }
  0x7e   :  { %v440_v29 = vadd.f32 %v439_v61, %v433_v14  ;;  %v496_v34 = vadd.f32 %v495_v7, %v489_v15  ;;  %v516_v36 = vmul.f32 %v1363_v2, %v988_v6  ;;  %v523_v38 = vmul.f32 %v1369_v22, %v989_v20  ;;  %v1010_v6 = vld [vmem:[#allocation9 + $0x46] ss:$0 sm:$0xff]  ;;  %v1011_v14 = vld [vmem:[#allocation9 + $0x47] ss:$0 sm:$0xff]  ;;  %v1012_v15 = vld [vmem:[#allocation9 + $0x48] ss:$0 sm:$0xff] }
  0x7f   :  { %v552_v57 = vadd.f32 %v551_v53, %v545_v26  ;;  %v565_v40 = vmul.f32 %v1345_v32, %v994_v21  ;;  %v605_v43 = vmul.f32 %v604_v49, %v604_v49  ;;  %v572_v47 = vmul.f32 %v1349_v39, %v995_v28 }
  0x80   :  { %v447_v44 = vadd.f32 %v446_v62, %v440_v29  ;;  %v503_v45 = vadd.f32 %v502_v16, %v496_v34  ;;  %v614_v50 = vmul.f32 %v1324_v4, %v1000_v31  ;;  %v1074_v52 = vpop.eup %1073  ;;  %v530_v10 = vmul.f32 1.442695, %v529_v25  ;;  %v1006_v25 = vld [vmem:[#allocation9 + $0x42] ss:$0 sm:$0xff]  ;;  %v1013_v29 = vld [vmem:[#allocation9 + $0x49] ss:$0 sm:$0xff] }
  0x81   :  { %v559_v54 = vadd.f32 %v558_v27, %v552_v57  ;;  %v621_v59 = vmul.f32 %v1329_v11, %v1001_v9  ;;  %v628_v60 = vmul.f32 %v1333_v19, %v1002_v37  ;;  %v372_v61 = vadd.f32 %v371_v5, %v295_v23  ;;  %v1008_v9 = vld [vmem:[#allocation9 + $0x44] ss:$0 sm:$0xff] }
  0x82   :  { %v510_v63 = vadd.f32 %v509_v33, %v503_v45  ;;  %v579_v49 = vmul.f32 %v1352_v46, %v996_v42  ;;  %v606_v62 = vmul.f32 -0.5624999, %v605_v43  ;;  %v586_v7 = vmul.f32 %v1359_v58, %v997_v48  ;;  %v1014_v45 = vld [vmem:[#allocation9 + $0x4a] ss:$0 sm:$0xff] }
  0x83   :  { %v566_v3 = vadd.f32 %v565_v40, %v559_v54  ;;  %v622_v17 = vadd.f32 %v621_v59, %v614_v50  ;;  %v635_v0 = vmul.f32 %v1338_v24, %v1003_v51  ;;  %v448_v12 = vmul.f32 %v1074_v52, %v447_v44  ;;  %v1015_v51 = vld [vmem:[#allocation9 + $0x4b] ss:$0 sm:$0xff]  ;;  %v1020_v52 = vld [vmem:[#allocation9 + $0x50] ss:$0 sm:$0xff] }
  0x84   :  { %v517_v13 = vadd.f32 %v516_v36, %v510_v63  ;;  %v593_v53 = vmul.f32 %v1363_v2, %v998_v55  ;;  %v600_v5 = vmul.f32 %v1369_v22, %v999_v56  ;;  %v1076_v16 = vpop.eup %1075  ;;  %1077 = vpow2.f32 %v530_v10  ;;  %v1007_v36 = vld [vmem:[#allocation9 + $0x43] ss:$0 sm:$0xff]  ;;  %v1021_v56 = vld [vmem:[#allocation9 + $0x51] ss:$0 sm:$0xff]  ;;  %v1016_v63 = vld [vmem:[#allocation9 + $0x4c] ss:$0 sm:$0xff] }
  0x85   :  { %v573_v20 = vadd.f32 %v572_v47, %v566_v3  ;;  %v629_v21 = vadd.f32 %v628_v60, %v622_v17  ;;  %v642_v23 = vmul.f32 %v1345_v32, %v1004_v1  ;;  %v607_v26 = vmul.f32 1.442695, %v606_v62  ;;  %v1023_v17 = vld [vmem:[#allocation9 + $0x53] ss:$0 sm:$0xff] }
  0x86   :  { %v649_v27 = vmul.f32 %v1349_v39, %v1005_v8  ;;  %v681_v28 = vsub.f32 %v1313_v35, %v122_v18  ;;  %v691_v31 = vmul.f32 %v1324_v4, %v1010_v6  ;;  %v698_v37 = vmul.f32 %v1329_v11, %v1011_v14  ;;  %v1009_v8 = vld [vmem:[#allocation9 + $0x45] ss:$0 sm:$0xff] }
  0x87   :  { %v580_v34 = vadd.f32 %v579_v49, %v573_v20  ;;  %v636_v33 = vadd.f32 %v635_v0, %v629_v21  ;;  %v705_v57 = vmul.f32 %v1333_v19, %v1012_v15  ;;  %v449_v40 = vadd.f32 %v448_v12, %v372_v61  ;;  %v1022_v49 = vld [vmem:[#allocation9 + $0x52] ss:$0 sm:$0xff]  ;;  %v1024_v21 = vld [vmem:[#allocation9 + $0x54] ss:$0 sm:$0xff] }
  0x88   :  { %v524_v42 = vadd.f32 %v523_v38, %v517_v13  ;;  %v656_v43 = vmul.f32 %v1352_v46, %v1006_v25  ;;  %v682_v44 = vmul.f32 %v681_v28, %v681_v28  ;;  %v699_v18 = vadd.f32 %v698_v37, %v691_v31  ;;  %v1017_v13 = vld [vmem:[#allocation9 + $0x4d] ss:$0 sm:$0xff] }
  0x89   :  { %v587_v47 = vadd.f32 %v586_v7, %v580_v34  ;;  %v643_v48 = vadd.f32 %v642_v23, %v636_v33  ;;  %v712_v50 = vmul.f32 %v1338_v24, %v1013_v29  ;;  %1079 = vpow2.f32 %v607_v26  ;;  %v1018_v26 = vld [vmem:[#allocation9 + $0x4e] ss:$0 sm:$0xff] }
  0x8a   :  { %v663_v10 = vmul.f32 %v1359_v58, %v1007_v36  ;;  %v670_v54 = vmul.f32 %v1363_v2, %v1008_v9  ;;  %v683_v55 = vmul.f32 -0.5624999, %v682_v44  ;;  %v706_v60 = vadd.f32 %v705_v57, %v699_v18  ;;  %v1026_v36 = vld [vmem:[#allocation9 + $0x56] ss:$0 sm:$0xff]  ;;  %v1032_v44 = vld [vmem:[#allocation9 + $0x5c] ss:$0 sm:$0xff] }
  0x8b   :  { %v594_v38 = vadd.f32 %v593_v53, %v587_v47  ;;  %v650_v59 = vadd.f32 %v649_v27, %v643_v48  ;;  %v719_v61 = vmul.f32 %v1345_v32, %v1014_v45  ;;  %v525_v62 = vmul.f32 %v1076_v16, %v524_v42  ;;  %v1030_v42 = vld [vmem:[#allocation9 + $0x5a] ss:$0 sm:$0xff] }
  0x8c   :  { %v726_v1 = vmul.f32 %v1349_v39, %v1015_v51  ;;  %v758_v3 = vsub.f32 %v1313_v35, %v129_v30  ;;  %v768_v7 = vmul.f32 %v1324_v4, %v1020_v52  ;;  %v684_v6 = vmul.f32 1.442695, %v683_v55  ;;  %v1033_v55 = vld [vmem:[#allocation9 + $0x5d] ss:$0 sm:$0xff] }
  0x8d   :  { %v657_v0 = vadd.f32 %v656_v43, %v650_v59  ;;  %v713_v12 = vadd.f32 %v712_v50, %v706_v60  ;;  %v775_v53 = vmul.f32 %v1329_v11, %v1021_v56  ;;  %v601_v14 = vadd.f32 %v600_v5, %v594_v38  ;;  %v1025_v5 = vld [vmem:[#allocation9 + $0x55] ss:$0 sm:$0xff]  ;;  %v1031_v43 = vld [vmem:[#allocation9 + $0x5b] ss:$0 sm:$0xff]  ;;  %v1019_v50 = vld [vmem:[#allocation9 + $0x4f] ss:$0 sm:$0xff] }
  0x8e   :  { %v733_v15 = vmul.f32 %v1352_v46, %v1016_v63  ;;  %v759_v20 = vmul.f32 %v758_v3, %v758_v3  ;;  %v782_v16 = vmul.f32 %v1333_v19, %v1022_v49  ;;  %v1078_v23 = vpop.eup %1077  ;;  %v789_v28 = vmul.f32 %v1338_v24, %v1023_v17  ;;  %v1027_v59 = vld [vmem:[#allocation9 + $0x57] ss:$0 sm:$0xff] }
  0x8f   :  { %v664_v25 = vadd.f32 %v663_v10, %v657_v0  ;;  %v720_v30 = vadd.f32 %v719_v61, %v713_v12  ;;  %v776_v27 = vadd.f32 %v775_v53, %v768_v7  ;;  %v526_v31 = vadd.f32 %v525_v62, %v449_v40  ;;  %v1029_v12 = vld [vmem:[#allocation9 + $0x59] ss:$0 sm:$0xff] }
  0x90   :  { %v677_v29 = vmul.f32 %v1369_v22, %v1009_v8  ;;  %v740_v34 = vmul.f32 %v1359_v58, %v1017_v13  ;;  %v760_v33 = vmul.f32 -0.5624999, %v759_v20  ;;  %1081 = vpow2.f32 %v684_v6 }
  0x91   :  { %v727_v9 = vadd.f32 %v726_v1, %v720_v30  ;;  %v783_v37 = vadd.f32 %v782_v16, %v776_v27  ;;  %v796_v57 = vmul.f32 %v1345_v32, %v1024_v21  ;;  %v602_v45 = vmul.f32 %v1078_v23, %v601_v14  ;;  %v1034_v1 = vld [vmem:[#allocation9 + $0x5e] ss:$0 sm:$0xff]  ;;  %v1036_v16 = vld [vmem:[#allocation9 + $0x60] ss:$0 sm:$0xff] }
  0x92   :  { %v671_v47 = vadd.f32 %v670_v54, %v664_v25  ;;  %v747_v40 = vmul.f32 %v1363_v2, %v1018_v26  ;;  %v761_v48 = vmul.f32 1.442695, %v760_v33  ;;  %v803_v52 = vmul.f32 %v1349_v39, %v1025_v5 }
  0x93   :  { %v734_v18 = vadd.f32 %v733_v15, %v727_v9  ;;  %v790_v51 = vadd.f32 %v789_v28, %v783_v37  ;;  %v835_v10 = vsub.f32 %v1313_v35, %v136_v41  ;;  %v1080_v56 = vpop.eup %1079  ;;  %v810_v38 = vmul.f32 %v1352_v46, %v1026_v36  ;;  %v1028_v35 = vld [vmem:[#allocation9 + $0x58] ss:$0 sm:$0xff]  ;;  %v1037_v28 = vld [vmem:[#allocation9 + $0x61] ss:$0 sm:$0xff] }
  0x94   :  { %v845_v60 = vmul.f32 %v1324_v4, %v1030_v42  ;;  %v852_v54 = vmul.f32 %v1329_v11, %v1031_v43  ;;  %v859_v61 = vmul.f32 %v1333_v19, %v1032_v44  ;;  %1083 = vpow2.f32 %v761_v48  ;;  %v1035_v11 = vld [vmem:[#allocation9 + $0x5f] ss:$0 sm:$0xff]  ;;  %v1039_v42 = vld [vmem:[#allocation9 + $0x63] ss:$0 sm:$0xff] }
  0x95   :  { %v741_v63 = vadd.f32 %v740_v34, %v734_v18  ;;  %v797_v49 = vadd.f32 %v796_v57, %v790_v51  ;;  %v836_v62 = vmul.f32 %v835_v10, %v835_v10  ;;  %v678_v3 = vadd.f32 %v677_v29, %v671_v47  ;;  %v1038_v34 = vld [vmem:[#allocation9 + $0x62] ss:$0 sm:$0xff] }
  0x96   :  { %v754_v7 = vmul.f32 %v1369_v22, %v1019_v50  ;;  %v853_v41 = vadd.f32 %v852_v54, %v845_v60  ;;  %v866_v17 = vmul.f32 %v1338_v24, %v1033_v55  ;;  %v817_v4 = vmul.f32 %v1359_v58, %v1027_v59 }
  0x97   :  { %v748_v0 = vadd.f32 %v747_v40, %v741_v63  ;;  %v804_v8 = vadd.f32 %v803_v52, %v797_v49  ;;  %v837_v6 = vmul.f32 -0.5624999, %v836_v62  ;;  %v873_v13 = vmul.f32 %v1345_v32, %v1034_v1 }
  0x98   :  { %v860_v19 = vadd.f32 %v859_v61, %v853_v41  ;;  %v603_v53 = vadd.f32 %v602_v45, %v526_v31  ;;  %v824_v15 = vmul.f32 %v1363_v2, %v1028_v35  ;;  %v679_v21 = vmul.f32 %v1080_v56, %v678_v3 }
  0x99   :  { %v811_v14 = vadd.f32 %v810_v38, %v804_v8  ;;  %v838_v20 = vmul.f32 1.442695, %v837_v6  ;;  %v755_v23 = vadd.f32 %v754_v7, %v748_v0  ;;  %v880_v24 = vmul.f32 %v1349_v39, %v1035_v11 }
  0x9a   :  { %v867_v25 = vadd.f32 %v866_v17, %v860_v19  ;;  %v1082_v30 = vpop.eup %1081  ;;  %v831_v27 = vmul.f32 %v1369_v22, %v1029_v12  ;;  %v887_v32 = vmul.f32 %v1352_v46, %v1036_v16  ;;  %v680_v33 = vadd.f32 %v679_v21, %v603_v53 }
  0x9b   :  { %v818_v26 = vadd.f32 %v817_v4, %v811_v14  ;;  %1085 = vpow2.f32 %v838_v20  ;;  %v756_v5 = vmul.f32 %v1082_v30, %v755_v23  ;;  %v894_v9 = vmul.f32 %v1359_v58, %v1037_v28 }
  0x9c   :  { %v874_v29 = vadd.f32 %v873_v13, %v867_v25  ;;  %v901_v43 = vmul.f32 %v1363_v2, %v1038_v34  ;;  %v908_v40 = vmul.f32 %v1369_v22, %v1039_v42 }
  0x9d   :  { %v825_v31 = vadd.f32 %v824_v15, %v818_v26  ;;  %v757_v44 = vadd.f32 %v756_v5, %v680_v33 }
  0x9e   :  { %v881_v36 = vadd.f32 %v880_v24, %v874_v29  ;;  %v1084_v37 = vpop.eup %1083 }
  0x9f   :  { %v832_v57 = vadd.f32 %v831_v27, %v825_v31 }
  0xa0   :  { %v888_v39 = vadd.f32 %v887_v32, %v881_v36 }
  0xa1   :  { %v833_v45 = vmul.f32 %v1084_v37, %v832_v57 }
  0xa2   :  { %v895_v47 = vadd.f32 %v894_v9, %v888_v39 }
  0xa3   :  { %v834_v18 = vadd.f32 %v833_v45, %v757_v44 }
  0xa4   :  { %v902_v48 = vadd.f32 %v901_v43, %v895_v47 }
  0xa5   :  { %v1086_v46 = vpop.eup %1085 }
  0xa6   :  { %v909_v50 = vadd.f32 %v908_v40, %v902_v48 }
  0xa8   :  { %v910_v51 = vmul.f32 %v1086_v46, %v909_v50 }
  0xaa   :  { %v911_v52 = vadd.f32 %v910_v51, %v834_v18 }
  0xac   :  { %912 = vst [vmem:[#allocation10] sm:$0xff] %v911_v52 }
  0xad   :  { %1177 = shalt.err (!%p1174_p9)
}
  0xae   :  { %s1178_s22 = scalar_lea.hbm %s1484_s4, 128 }
  0xaf   :  { %p1179_p10 = scmp.ne.s32.totalorder %s1484_s4, %s1178_s22  ;;  %p1182_p11 = scmp.lt.u32.totalorder %s1178_s22, %s1484_s4 }
  0xb1   :  { %p1184_p12 = pnand %p1182_p11, %p1179_p10 }
  0xb3   :  { %1187 = shalt.err (!%p1184_p12)
}
  0xb4   :  { %922 = dma.vmem_to_hbm [thread:$0]  %s920_s19, 128, %s1484_s4, [#allocation4]  }
  0xb5   :  { %1194 = dma.done.wait [#allocation4], 128  }
  0xb6   :  { %1195 = vsyncadd [#allocation4], 4294967168 }
  0xb7   :  { %926 = vsyncpa [#allocation3], 1 }
  0xb8   :  { %927 = vsyncpa [#allocation8], 1 }
  0xb9   :  { %928 = vsyncpa [#allocation4], 1 }
  0xba   :  { %929 = vsyncpa [#allocation5], 1 }

</bundles_post_ra>
